<compile_context>
chip_gen: v5e
topology: v5e:2x2
jax: 0.10.0
libtpu: 0.0.40
codegen_flags: <defaults>
</compile_context>

<pallas_src>
import functools

import jax
import jax.numpy as jnp
import numpy as np
from jax.experimental import pallas as pl
from jax.experimental.pallas import tpu as pltpu


def seq2seq_kernel(xin_ref, wih_ref, b_e_ref, b_d_ref,
                   whh_e_ref, whh_d_ref, wout_ref, bout_ref,
                   out_ref, *, batch, hidden, s_len, t_len):
    B, H = batch, hidden
    G = 4 * H

    whh_e = whh_e_ref[...]
    whh_d = whh_d_ref[...]

    # ---- one fused input-side gate projection (encoder + decoder) ----------
    # xin is block-diagonally packed in the wrapper, so a single matmul yields
    # both gx_e and gx_d; splitting is a static, sublane-aligned slice.
    gx_all = jnp.dot(xin_ref[...], wih_ref[...],
                     preferred_element_type=jnp.float32)          # ((S+T)*B, 4H)
    gx_e = gx_all[0:s_len * B, :] + b_e_ref[...]                  # (S*B, 4H)
    gx_d = gx_all[s_len * B:(s_len + t_len) * B, :] + b_d_ref[...]  # (T*B, 4H)

    # Lane mask selecting the g-gate block (PyTorch gate order i, f, g, o).
    lane = jax.lax.broadcasted_iota(jnp.int32, (B, G), 1)
    g_mask = (lane >= 2 * H) & (lane < 3 * H)

    def cell(gates_x, h, c, whh):
        # Only the recurrent h @ W_hh matmul sits on the serial path.
        gates = gates_x + jnp.dot(h, whh, preferred_element_type=jnp.float32)
        # Two full-width EUP passes (tanh + sigmoid) instead of four per-gate.
        act = jnp.where(g_mask, jnp.tanh(gates), jax.nn.sigmoid(gates))
        i = act[:, 0 * H:1 * H]
        f = act[:, 1 * H:2 * H]
        g = act[:, 2 * H:3 * H]
        o = act[:, 3 * H:4 * H]
        c_new = f * c + i * g
        h_new = o * jnp.tanh(c_new)
        return h_new, c_new

    h = jnp.zeros((B, H), jnp.float32)
    c = jnp.zeros((B, H), jnp.float32)

    # ---- encoder: fully unrolled (short fixed trip count) -------------------
    for t in range(s_len):
        h, c = cell(gx_e[t * B:(t + 1) * B, :], h, c, whh_e)

    # ---- decoder: teacher forcing (ratio == 1); h kept live in vregs --------
    hs = []
    for t in range(t_len):
        h, c = cell(gx_d[t * B:(t + 1) * B, :], h, c, whh_d)
        hs.append(h)

    # ---- single deferred output projection + one lane-dense bulk store ------
    h_all = jnp.concatenate(hs, axis=0)                           # (T*B, H)
    out_ref[...] = (jnp.dot(h_all, wout_ref[...],
                            preferred_element_type=jnp.float32) + bout_ref[...])


def init_params(key, d_in, hidden, d_out):
    ks = jax.random.split(key, 8)
    scale = 0.1
    return {
        # encoder LSTM (weights stored pre-transposed for x @ W)
        "wih_e": scale * jax.random.normal(ks[0], (d_in, 4 * hidden), jnp.float32),
        "whh_e": scale * jax.random.normal(ks[1], (hidden, 4 * hidden), jnp.float32),
        "b_e":   scale * jax.random.normal(ks[2], (1, 4 * hidden), jnp.float32),
        # decoder LSTM (input size = d_out)
        "wih_d": scale * jax.random.normal(ks[3], (d_out, 4 * hidden), jnp.float32),
        "whh_d": scale * jax.random.normal(ks[4], (hidden, 4 * hidden), jnp.float32),
        "b_d":   scale * jax.random.normal(ks[5], (1, 4 * hidden), jnp.float32),
        # decoder output projection
        "wout":  scale * jax.random.normal(ks[6], (hidden, d_out), jnp.float32),
        "bout":  scale * jax.random.normal(ks[7], (1, d_out), jnp.float32),
    }


def seq2seq_forward(params, input_sequence, target_sequence):
    """input_sequence: (B, S, D_in), target_sequence: (B, T, D_out) -> (B, T, D_out)."""
    B, S, D_in = input_sequence.shape
    _, T, D_out = target_sequence.shape
    H = params["whh_e"].shape[0]
    D_out_pad = ((D_out + 127) // 128) * 128          # lane-dense output store

    # Time-major flatten: row t*B + b  <->  (time t, batch b).
    x_flat = jnp.transpose(input_sequence, (1, 0, 2)).reshape(S * B, D_in)
    x_flat = x_flat.astype(jnp.float32)
    y_tm = jnp.transpose(target_sequence, (1, 0, 2)).astype(jnp.float32)   # (T, B, D_out)
    # Teacher-forced decoder inputs: step 0 = zeros, step t = y[:, t-1, :].
    dec_in_flat = jnp.concatenate(
        [jnp.zeros((1, B, D_out), jnp.float32), y_tm[:T - 1]], axis=0
    ).reshape(T * B, D_out)

    # Block-diagonal packing so the kernel does ONE input-side projection:
    #   [ x_flat      0       ]   [ wih_e ]
    #   [ 0        dec_in_flat] @ [ wih_d ]
    xin = jnp.zeros((S * B + T * B, D_in + D_out), jnp.float32)
    xin = xin.at[:S * B, :D_in].set(x_flat)
    xin = xin.at[S * B:, D_in:].set(dec_in_flat)
    wih = jnp.concatenate([params["wih_e"], params["wih_d"]], axis=0)  # (D_in+D_out, 4H)

    # Pad output projection to a lane-dense width; slice back after the call.
    wout_pad = jnp.zeros((H, D_out_pad), jnp.float32).at[:, :D_out].set(params["wout"])
    bout_pad = jnp.zeros((1, D_out_pad), jnp.float32).at[:, :D_out].set(params["bout"])

    vmem = pl.BlockSpec(memory_space=pltpu.MemorySpace.VMEM)
    kernel = functools.partial(seq2seq_kernel, batch=B, hidden=H, s_len=S, t_len=T)

    out_flat = pl.pallas_call(
        kernel,
        out_shape=jax.ShapeDtypeStruct((T * B, D_out_pad), jnp.float32),
        in_specs=[vmem] * 8,
        out_specs=vmem,
    )(xin, wih,
      params["b_e"], params["b_d"],
      params["whh_e"], params["whh_d"],
      wout_pad, bout_pad)

    out_flat = out_flat[:, :D_out]
    return jnp.transpose(out_flat.reshape(T, B, D_out), (1, 0, 2))     # (B, T, D_out)


# ----------------------------- pure-JAX reference -----------------------------
def _ref_lstm_step(x_t, h, c, w_ih, w_hh, b, hidden):
    gates = x_t @ w_ih + h @ w_hh + b
    i = jax.nn.sigmoid(gates[:, 0 * hidden:1 * hidden])
    f = jax.nn.sigmoid(gates[:, 1 * hidden:2 * hidden])
    g = jnp.tanh(gates[:, 2 * hidden:3 * hidden])
    o = jax.nn.sigmoid(gates[:, 3 * hidden:4 * hidden])
    c = f * c + i * g
    h = o * jnp.tanh(c)
    return h, c


def seq2seq_ref(params, x, y):
    B, S, _ = x.shape
    _, T, D_out = y.shape
    hidden = params["whh_e"].shape[0]
    h = jnp.zeros((B, hidden), jnp.float32)
    c = jnp.zeros((B, hidden), jnp.float32)
    for t in range(S):
        h, c = _ref_lstm_step(x[:, t, :], h, c,
                              params["wih_e"], params["whh_e"], params["b_e"], hidden)
    inp = jnp.zeros((B, D_out), jnp.float32)
    outs = []
    for t in range(T):
        h, c = _ref_lstm_step(inp, h, c,
                              params["wih_d"], params["whh_d"], params["b_d"], hidden)
        o = h @ params["wout"] + params["bout"]
        outs.append(o[:, None, :])
        inp = y[:, t, :]                      # teacher forcing
    return jnp.concatenate(outs, axis=1)


if __name__ == "__main__":
    B, S, T = 2, 8, 8
    D_in, hidden, D_out = 16, 32, 16

    key = jax.random.PRNGKey(0)
    k_x, k_y, k_p = jax.random.split(key, 3)
    input_sequence = jax.random.normal(k_x, (B, S, D_in), jnp.float32)
    target_sequence = jax.random.normal(k_y, (B, T, D_out), jnp.float32)
    params = init_params(k_p, D_in, hidden, D_out)

    out = seq2seq_forward(params, input_sequence, target_sequence)
    out = jax.block_until_ready(out)

    ref = seq2seq_ref(params, input_sequence, target_sequence)
    np.testing.assert_allclose(np.asarray(out), np.asarray(ref), rtol=1e-4, atol=1e-5)

    print("KERNEL_OK")
</pallas_src>

<mosaic_0001>
module attributes {stable_mosaic.version = 11 : i64} {
  func.func @seq2seq_kernel(%arg0: memref<32x32xf32, #tpu.memory_space<vmem>>, %arg1: memref<32x128xf32, #tpu.memory_space<vmem>>, %arg2: memref<1x128xf32, #tpu.memory_space<vmem>>, %arg3: memref<1x128xf32, #tpu.memory_space<vmem>>, %arg4: memref<32x128xf32, #tpu.memory_space<vmem>>, %arg5: memref<32x128xf32, #tpu.memory_space<vmem>>, %arg6: memref<32x128xf32, #tpu.memory_space<vmem>>, %arg7: memref<1x128xf32, #tpu.memory_space<vmem>>, %arg8: memref<16x128xf32, #tpu.memory_space<vmem>>) attributes {dimension_semantics = [], scalar_prefetch = 0 : i64, scratch_operands = 0 : i64, tpu.core_type = #tpu.core_type<tc>} {
    %c0 = arith.constant 0 : index
    %c0_0 = arith.constant 0 : index
    %0 = vector.load %arg4[%c0, %c0_0] : memref<32x128xf32, #tpu.memory_space<vmem>>, vector<32x128xf32>
    %c0_1 = arith.constant 0 : index
    %c0_2 = arith.constant 0 : index
    %1 = vector.load %arg5[%c0_1, %c0_2] : memref<32x128xf32, #tpu.memory_space<vmem>>, vector<32x128xf32>
    %c0_3 = arith.constant 0 : index
    %c0_4 = arith.constant 0 : index
    %2 = vector.load %arg0[%c0_3, %c0_4] : memref<32x32xf32, #tpu.memory_space<vmem>>, vector<32x32xf32>
    %c0_5 = arith.constant 0 : index
    %c0_6 = arith.constant 0 : index
    %3 = vector.load %arg1[%c0_5, %c0_6] : memref<32x128xf32, #tpu.memory_space<vmem>>, vector<32x128xf32>
    %cst = arith.constant dense<0.000000e+00> : vector<32x128xf32>
    %4 = tpu.matmul %2, %3, %cst {dimension_numbers = #tpu.dot_dimension_numbers<[1], [0], [0], [1], [0, 0, 1, 1], [], []>} : vector<32x32xf32>, vector<32x128xf32>, vector<32x128xf32> -> vector<32x128xf32>
    %5 = vector.extract_strided_slice %4 {offsets = [0, 0], sizes = [16, 128], strides = [1, 1]} : vector<32x128xf32> to vector<16x128xf32>
    %c0_7 = arith.constant 0 : index
    %c0_8 = arith.constant 0 : index
    %6 = vector.load %arg2[%c0_7, %c0_8] : memref<1x128xf32, #tpu.memory_space<vmem>>, vector<1x128xf32>
    %7 = vector.broadcast %6 : vector<1x128xf32> to vector<16x128xf32>
    %8 = arith.addf %5, %7 : vector<16x128xf32>
    %9 = vector.extract_strided_slice %4 {offsets = [16, 0], sizes = [16, 128], strides = [1, 1]} : vector<32x128xf32> to vector<16x128xf32>
    %c0_9 = arith.constant 0 : index
    %c0_10 = arith.constant 0 : index
    %10 = vector.load %arg3[%c0_9, %c0_10] : memref<1x128xf32, #tpu.memory_space<vmem>>, vector<1x128xf32>
    %11 = vector.broadcast %10 : vector<1x128xf32> to vector<16x128xf32>
    %12 = arith.addf %9, %11 : vector<16x128xf32>
    %13 = tpu.iota {dimensions = array<i32: 1>} : vector<2x128xi32>
    %c64_i32 = arith.constant 64 : i32
    %14 = vector.broadcast %c64_i32 : i32 to vector<2x128xi32>
    %15 = arith.cmpi sge, %13, %14 : vector<2x128xi32>
    %c96_i32 = arith.constant 96 : i32
    %16 = vector.broadcast %c96_i32 : i32 to vector<2x128xi32>
    %17 = arith.cmpi slt, %13, %16 : vector<2x128xi32>
    %18 = arith.andi %15, %17 : vector<2x128xi1>
    %cst_11 = arith.constant 0.000000e+00 : f32
    %19 = vector.broadcast %cst_11 : f32 to vector<2x32xf32>
    %cst_12 = arith.constant 0.000000e+00 : f32
    %20 = vector.broadcast %cst_12 : f32 to vector<2x32xf32>
    %21 = vector.extract_strided_slice %8 {offsets = [0, 0], sizes = [2, 128], strides = [1, 1]} : vector<16x128xf32> to vector<2x128xf32>
    %cst_13 = arith.constant dense<0.000000e+00> : vector<2x128xf32>
    %22 = tpu.matmul %19, %0, %cst_13 {dimension_numbers = #tpu.dot_dimension_numbers<[1], [0], [0], [1], [0, 0, 1, 1], [], []>} : vector<2x32xf32>, vector<32x128xf32>, vector<2x128xf32> -> vector<2x128xf32>
    %23 = arith.addf %21, %22 : vector<2x128xf32>
    %24 = math.tanh %23 : vector<2x128xf32>
    %25 = arith.negf %23 : vector<2x128xf32>
    %26 = math.exp %25 : vector<2x128xf32>
    %cst_14 = arith.constant 1.000000e+00 : f32
    %27 = vector.broadcast %cst_14 : f32 to vector<2x128xf32>
    %28 = arith.addf %27, %26 : vector<2x128xf32>
    %29 = arith.divf %27, %28 : vector<2x128xf32>
    %30 = arith.select %18, %24, %29 : vector<2x128xi1>, vector<2x128xf32>
    %31 = vector.extract_strided_slice %30 {offsets = [0, 0], sizes = [2, 32], strides = [1, 1]} : vector<2x128xf32> to vector<2x32xf32>
    %32 = vector.extract_strided_slice %30 {offsets = [0, 32], sizes = [2, 32], strides = [1, 1]} : vector<2x128xf32> to vector<2x32xf32>
    %33 = vector.extract_strided_slice %30 {offsets = [0, 64], sizes = [2, 32], strides = [1, 1]} : vector<2x128xf32> to vector<2x32xf32>
    %34 = vector.extract_strided_slice %30 {offsets = [0, 96], sizes = [2, 32], strides = [1, 1]} : vector<2x128xf32> to vector<2x32xf32>
    %35 = arith.mulf %32, %20 : vector<2x32xf32>
    %36 = arith.mulf %31, %33 : vector<2x32xf32>
    %37 = arith.addf %35, %36 : vector<2x32xf32>
    %38 = math.tanh %37 : vector<2x32xf32>
    %39 = arith.mulf %34, %38 : vector<2x32xf32>
    %40 = vector.extract_strided_slice %8 {offsets = [2, 0], sizes = [2, 128], strides = [1, 1]} : vector<16x128xf32> to vector<2x128xf32>
    %cst_15 = arith.constant dense<0.000000e+00> : vector<2x128xf32>
    %41 = tpu.matmul %39, %0, %cst_15 {dimension_numbers = #tpu.dot_dimension_numbers<[1], [0], [0], [1], [0, 0, 1, 1], [], []>} : vector<2x32xf32>, vector<32x128xf32>, vector<2x128xf32> -> vector<2x128xf32>
    %42 = arith.addf %40, %41 : vector<2x128xf32>
    %43 = math.tanh %42 : vector<2x128xf32>
    %44 = arith.negf %42 : vector<2x128xf32>
    %45 = math.exp %44 : vector<2x128xf32>
    %cst_16 = arith.constant 1.000000e+00 : f32
    %46 = vector.broadcast %cst_16 : f32 to vector<2x128xf32>
    %47 = arith.addf %46, %45 : vector<2x128xf32>
    %48 = arith.divf %46, %47 : vector<2x128xf32>
    %49 = arith.select %18, %43, %48 : vector<2x128xi1>, vector<2x128xf32>
    %50 = vector.extract_strided_slice %49 {offsets = [0, 0], sizes = [2, 32], strides = [1, 1]} : vector<2x128xf32> to vector<2x32xf32>
    %51 = vector.extract_strided_slice %49 {offsets = [0, 32], sizes = [2, 32], strides = [1, 1]} : vector<2x128xf32> to vector<2x32xf32>
    %52 = vector.extract_strided_slice %49 {offsets = [0, 64], sizes = [2, 32], strides = [1, 1]} : vector<2x128xf32> to vector<2x32xf32>
    %53 = vector.extract_strided_slice %49 {offsets = [0, 96], sizes = [2, 32], strides = [1, 1]} : vector<2x128xf32> to vector<2x32xf32>
    %54 = arith.mulf %51, %37 : vector<2x32xf32>
    %55 = arith.mulf %50, %52 : vector<2x32xf32>
    %56 = arith.addf %54, %55 : vector<2x32xf32>
    %57 = math.tanh %56 : vector<2x32xf32>
    %58 = arith.mulf %53, %57 : vector<2x32xf32>
    %59 = vector.extract_strided_slice %8 {offsets = [4, 0], sizes = [2, 128], strides = [1, 1]} : vector<16x128xf32> to vector<2x128xf32>
    %cst_17 = arith.constant dense<0.000000e+00> : vector<2x128xf32>
    %60 = tpu.matmul %58, %0, %cst_17 {dimension_numbers = #tpu.dot_dimension_numbers<[1], [0], [0], [1], [0, 0, 1, 1], [], []>} : vector<2x32xf32>, vector<32x128xf32>, vector<2x128xf32> -> vector<2x128xf32>
    %61 = arith.addf %59, %60 : vector<2x128xf32>
    %62 = math.tanh %61 : vector<2x128xf32>
    %63 = arith.negf %61 : vector<2x128xf32>
    %64 = math.exp %63 : vector<2x128xf32>
    %cst_18 = arith.constant 1.000000e+00 : f32
    %65 = vector.broadcast %cst_18 : f32 to vector<2x128xf32>
    %66 = arith.addf %65, %64 : vector<2x128xf32>
    %67 = arith.divf %65, %66 : vector<2x128xf32>
    %68 = arith.select %18, %62, %67 : vector<2x128xi1>, vector<2x128xf32>
    %69 = vector.extract_strided_slice %68 {offsets = [0, 0], sizes = [2, 32], strides = [1, 1]} : vector<2x128xf32> to vector<2x32xf32>
    %70 = vector.extract_strided_slice %68 {offsets = [0, 32], sizes = [2, 32], strides = [1, 1]} : vector<2x128xf32> to vector<2x32xf32>
    %71 = vector.extract_strided_slice %68 {offsets = [0, 64], sizes = [2, 32], strides = [1, 1]} : vector<2x128xf32> to vector<2x32xf32>
    %72 = vector.extract_strided_slice %68 {offsets = [0, 96], sizes = [2, 32], strides = [1, 1]} : vector<2x128xf32> to vector<2x32xf32>
    %73 = arith.mulf %70, %56 : vector<2x32xf32>
    %74 = arith.mulf %69, %71 : vector<2x32xf32>
    %75 = arith.addf %73, %74 : vector<2x32xf32>
    %76 = math.tanh %75 : vector<2x32xf32>
    %77 = arith.mulf %72, %76 : vector<2x32xf32>
    %78 = vector.extract_strided_slice %8 {offsets = [6, 0], sizes = [2, 128], strides = [1, 1]} : vector<16x128xf32> to vector<2x128xf32>
    %cst_19 = arith.constant dense<0.000000e+00> : vector<2x128xf32>
    %79 = tpu.matmul %77, %0, %cst_19 {dimension_numbers = #tpu.dot_dimension_numbers<[1], [0], [0], [1], [0, 0, 1, 1], [], []>} : vector<2x32xf32>, vector<32x128xf32>, vector<2x128xf32> -> vector<2x128xf32>
    %80 = arith.addf %78, %79 : vector<2x128xf32>
    %81 = math.tanh %80 : vector<2x128xf32>
    %82 = arith.negf %80 : vector<2x128xf32>
    %83 = math.exp %82 : vector<2x128xf32>
    %cst_20 = arith.constant 1.000000e+00 : f32
    %84 = vector.broadcast %cst_20 : f32 to vector<2x128xf32>
    %85 = arith.addf %84, %83 : vector<2x128xf32>
    %86 = arith.divf %84, %85 : vector<2x128xf32>
    %87 = arith.select %18, %81, %86 : vector<2x128xi1>, vector<2x128xf32>
    %88 = vector.extract_strided_slice %87 {offsets = [0, 0], sizes = [2, 32], strides = [1, 1]} : vector<2x128xf32> to vector<2x32xf32>
    %89 = vector.extract_strided_slice %87 {offsets = [0, 32], sizes = [2, 32], strides = [1, 1]} : vector<2x128xf32> to vector<2x32xf32>
    %90 = vector.extract_strided_slice %87 {offsets = [0, 64], sizes = [2, 32], strides = [1, 1]} : vector<2x128xf32> to vector<2x32xf32>
    %91 = vector.extract_strided_slice %87 {offsets = [0, 96], sizes = [2, 32], strides = [1, 1]} : vector<2x128xf32> to vector<2x32xf32>
    %92 = arith.mulf %89, %75 : vector<2x32xf32>
    %93 = arith.mulf %88, %90 : vector<2x32xf32>
    %94 = arith.addf %92, %93 : vector<2x32xf32>
    %95 = math.tanh %94 : vector<2x32xf32>
    %96 = arith.mulf %91, %95 : vector<2x32xf32>
    %97 = vector.extract_strided_slice %8 {offsets = [8, 0], sizes = [2, 128], strides = [1, 1]} : vector<16x128xf32> to vector<2x128xf32>
    %cst_21 = arith.constant dense<0.000000e+00> : vector<2x128xf32>
    %98 = tpu.matmul %96, %0, %cst_21 {dimension_numbers = #tpu.dot_dimension_numbers<[1], [0], [0], [1], [0, 0, 1, 1], [], []>} : vector<2x32xf32>, vector<32x128xf32>, vector<2x128xf32> -> vector<2x128xf32>
    %99 = arith.addf %97, %98 : vector<2x128xf32>
    %100 = math.tanh %99 : vector<2x128xf32>
    %101 = arith.negf %99 : vector<2x128xf32>
    %102 = math.exp %101 : vector<2x128xf32>
    %cst_22 = arith.constant 1.000000e+00 : f32
    %103 = vector.broadcast %cst_22 : f32 to vector<2x128xf32>
    %104 = arith.addf %103, %102 : vector<2x128xf32>
    %105 = arith.divf %103, %104 : vector<2x128xf32>
    %106 = arith.select %18, %100, %105 : vector<2x128xi1>, vector<2x128xf32>
    %107 = vector.extract_strided_slice %106 {offsets = [0, 0], sizes = [2, 32], strides = [1, 1]} : vector<2x128xf32> to vector<2x32xf32>
    %108 = vector.extract_strided_slice %106 {offsets = [0, 32], sizes = [2, 32], strides = [1, 1]} : vector<2x128xf32> to vector<2x32xf32>
    %109 = vector.extract_strided_slice %106 {offsets = [0, 64], sizes = [2, 32], strides = [1, 1]} : vector<2x128xf32> to vector<2x32xf32>
    %110 = vector.extract_strided_slice %106 {offsets = [0, 96], sizes = [2, 32], strides = [1, 1]} : vector<2x128xf32> to vector<2x32xf32>
    %111 = arith.mulf %108, %94 : vector<2x32xf32>
    %112 = arith.mulf %107, %109 : vector<2x32xf32>
    %113 = arith.addf %111, %112 : vector<2x32xf32>
    %114 = math.tanh %113 : vector<2x32xf32>
    %115 = arith.mulf %110, %114 : vector<2x32xf32>
    %116 = vector.extract_strided_slice %8 {offsets = [10, 0], sizes = [2, 128], strides = [1, 1]} : vector<16x128xf32> to vector<2x128xf32>
    %cst_23 = arith.constant dense<0.000000e+00> : vector<2x128xf32>
    %117 = tpu.matmul %115, %0, %cst_23 {dimension_numbers = #tpu.dot_dimension_numbers<[1], [0], [0], [1], [0, 0, 1, 1], [], []>} : vector<2x32xf32>, vector<32x128xf32>, vector<2x128xf32> -> vector<2x128xf32>
    %118 = arith.addf %116, %117 : vector<2x128xf32>
    %119 = math.tanh %118 : vector<2x128xf32>
    %120 = arith.negf %118 : vector<2x128xf32>
    %121 = math.exp %120 : vector<2x128xf32>
    %cst_24 = arith.constant 1.000000e+00 : f32
    %122 = vector.broadcast %cst_24 : f32 to vector<2x128xf32>
    %123 = arith.addf %122, %121 : vector<2x128xf32>
    %124 = arith.divf %122, %123 : vector<2x128xf32>
    %125 = arith.select %18, %119, %124 : vector<2x128xi1>, vector<2x128xf32>
    %126 = vector.extract_strided_slice %125 {offsets = [0, 0], sizes = [2, 32], strides = [1, 1]} : vector<2x128xf32> to vector<2x32xf32>
    %127 = vector.extract_strided_slice %125 {offsets = [0, 32], sizes = [2, 32], strides = [1, 1]} : vector<2x128xf32> to vector<2x32xf32>
    %128 = vector.extract_strided_slice %125 {offsets = [0, 64], sizes = [2, 32], strides = [1, 1]} : vector<2x128xf32> to vector<2x32xf32>
    %129 = vector.extract_strided_slice %125 {offsets = [0, 96], sizes = [2, 32], strides = [1, 1]} : vector<2x128xf32> to vector<2x32xf32>
    %130 = arith.mulf %127, %113 : vector<2x32xf32>
    %131 = arith.mulf %126, %128 : vector<2x32xf32>
    %132 = arith.addf %130, %131 : vector<2x32xf32>
    %133 = math.tanh %132 : vector<2x32xf32>
    %134 = arith.mulf %129, %133 : vector<2x32xf32>
    %135 = vector.extract_strided_slice %8 {offsets = [12, 0], sizes = [2, 128], strides = [1, 1]} : vector<16x128xf32> to vector<2x128xf32>
    %cst_25 = arith.constant dense<0.000000e+00> : vector<2x128xf32>
    %136 = tpu.matmul %134, %0, %cst_25 {dimension_numbers = #tpu.dot_dimension_numbers<[1], [0], [0], [1], [0, 0, 1, 1], [], []>} : vector<2x32xf32>, vector<32x128xf32>, vector<2x128xf32> -> vector<2x128xf32>
    %137 = arith.addf %135, %136 : vector<2x128xf32>
    %138 = math.tanh %137 : vector<2x128xf32>
    %139 = arith.negf %137 : vector<2x128xf32>
    %140 = math.exp %139 : vector<2x128xf32>
    %cst_26 = arith.constant 1.000000e+00 : f32
    %141 = vector.broadcast %cst_26 : f32 to vector<2x128xf32>
    %142 = arith.addf %141, %140 : vector<2x128xf32>
    %143 = arith.divf %141, %142 : vector<2x128xf32>
    %144 = arith.select %18, %138, %143 : vector<2x128xi1>, vector<2x128xf32>
    %145 = vector.extract_strided_slice %144 {offsets = [0, 0], sizes = [2, 32], strides = [1, 1]} : vector<2x128xf32> to vector<2x32xf32>
    %146 = vector.extract_strided_slice %144 {offsets = [0, 32], sizes = [2, 32], strides = [1, 1]} : vector<2x128xf32> to vector<2x32xf32>
    %147 = vector.extract_strided_slice %144 {offsets = [0, 64], sizes = [2, 32], strides = [1, 1]} : vector<2x128xf32> to vector<2x32xf32>
    %148 = vector.extract_strided_slice %144 {offsets = [0, 96], sizes = [2, 32], strides = [1, 1]} : vector<2x128xf32> to vector<2x32xf32>
    %149 = arith.mulf %146, %132 : vector<2x32xf32>
    %150 = arith.mulf %145, %147 : vector<2x32xf32>
    %151 = arith.addf %149, %150 : vector<2x32xf32>
    %152 = math.tanh %151 : vector<2x32xf32>
    %153 = arith.mulf %148, %152 : vector<2x32xf32>
    %154 = vector.extract_strided_slice %8 {offsets = [14, 0], sizes = [2, 128], strides = [1, 1]} : vector<16x128xf32> to vector<2x128xf32>
    %cst_27 = arith.constant dense<0.000000e+00> : vector<2x128xf32>
    %155 = tpu.matmul %153, %0, %cst_27 {dimension_numbers = #tpu.dot_dimension_numbers<[1], [0], [0], [1], [0, 0, 1, 1], [], []>} : vector<2x32xf32>, vector<32x128xf32>, vector<2x128xf32> -> vector<2x128xf32>
    %156 = arith.addf %154, %155 : vector<2x128xf32>
    %157 = math.tanh %156 : vector<2x128xf32>
    %158 = arith.negf %156 : vector<2x128xf32>
    %159 = math.exp %158 : vector<2x128xf32>
    %cst_28 = arith.constant 1.000000e+00 : f32
    %160 = vector.broadcast %cst_28 : f32 to vector<2x128xf32>
    %161 = arith.addf %160, %159 : vector<2x128xf32>
    %162 = arith.divf %160, %161 : vector<2x128xf32>
    %163 = arith.select %18, %157, %162 : vector<2x128xi1>, vector<2x128xf32>
    %164 = vector.extract_strided_slice %163 {offsets = [0, 0], sizes = [2, 32], strides = [1, 1]} : vector<2x128xf32> to vector<2x32xf32>
    %165 = vector.extract_strided_slice %163 {offsets = [0, 32], sizes = [2, 32], strides = [1, 1]} : vector<2x128xf32> to vector<2x32xf32>
    %166 = vector.extract_strided_slice %163 {offsets = [0, 64], sizes = [2, 32], strides = [1, 1]} : vector<2x128xf32> to vector<2x32xf32>
    %167 = vector.extract_strided_slice %163 {offsets = [0, 96], sizes = [2, 32], strides = [1, 1]} : vector<2x128xf32> to vector<2x32xf32>
    %168 = arith.mulf %165, %151 : vector<2x32xf32>
    %169 = arith.mulf %164, %166 : vector<2x32xf32>
    %170 = arith.addf %168, %169 : vector<2x32xf32>
    %171 = math.tanh %170 : vector<2x32xf32>
    %172 = arith.mulf %167, %171 : vector<2x32xf32>
    %173 = vector.extract_strided_slice %12 {offsets = [0, 0], sizes = [2, 128], strides = [1, 1]} : vector<16x128xf32> to vector<2x128xf32>
    %cst_29 = arith.constant dense<0.000000e+00> : vector<2x128xf32>
    %174 = tpu.matmul %172, %1, %cst_29 {dimension_numbers = #tpu.dot_dimension_numbers<[1], [0], [0], [1], [0, 0, 1, 1], [], []>} : vector<2x32xf32>, vector<32x128xf32>, vector<2x128xf32> -> vector<2x128xf32>
    %175 = arith.addf %173, %174 : vector<2x128xf32>
    %176 = math.tanh %175 : vector<2x128xf32>
    %177 = arith.negf %175 : vector<2x128xf32>
    %178 = math.exp %177 : vector<2x128xf32>
    %cst_30 = arith.constant 1.000000e+00 : f32
    %179 = vector.broadcast %cst_30 : f32 to vector<2x128xf32>
    %180 = arith.addf %179, %178 : vector<2x128xf32>
    %181 = arith.divf %179, %180 : vector<2x128xf32>
    %182 = arith.select %18, %176, %181 : vector<2x128xi1>, vector<2x128xf32>
    %183 = vector.extract_strided_slice %182 {offsets = [0, 0], sizes = [2, 32], strides = [1, 1]} : vector<2x128xf32> to vector<2x32xf32>
    %184 = vector.extract_strided_slice %182 {offsets = [0, 32], sizes = [2, 32], strides = [1, 1]} : vector<2x128xf32> to vector<2x32xf32>
    %185 = vector.extract_strided_slice %182 {offsets = [0, 64], sizes = [2, 32], strides = [1, 1]} : vector<2x128xf32> to vector<2x32xf32>
    %186 = vector.extract_strided_slice %182 {offsets = [0, 96], sizes = [2, 32], strides = [1, 1]} : vector<2x128xf32> to vector<2x32xf32>
    %187 = arith.mulf %184, %170 : vector<2x32xf32>
    %188 = arith.mulf %183, %185 : vector<2x32xf32>
    %189 = arith.addf %187, %188 : vector<2x32xf32>
    %190 = math.tanh %189 : vector<2x32xf32>
    %191 = arith.mulf %186, %190 : vector<2x32xf32>
    %192 = vector.extract_strided_slice %12 {offsets = [2, 0], sizes = [2, 128], strides = [1, 1]} : vector<16x128xf32> to vector<2x128xf32>
    %cst_31 = arith.constant dense<0.000000e+00> : vector<2x128xf32>
    %193 = tpu.matmul %191, %1, %cst_31 {dimension_numbers = #tpu.dot_dimension_numbers<[1], [0], [0], [1], [0, 0, 1, 1], [], []>} : vector<2x32xf32>, vector<32x128xf32>, vector<2x128xf32> -> vector<2x128xf32>
    %194 = arith.addf %192, %193 : vector<2x128xf32>
    %195 = math.tanh %194 : vector<2x128xf32>
    %196 = arith.negf %194 : vector<2x128xf32>
    %197 = math.exp %196 : vector<2x128xf32>
    %cst_32 = arith.constant 1.000000e+00 : f32
    %198 = vector.broadcast %cst_32 : f32 to vector<2x128xf32>
    %199 = arith.addf %198, %197 : vector<2x128xf32>
    %200 = arith.divf %198, %199 : vector<2x128xf32>
    %201 = arith.select %18, %195, %200 : vector<2x128xi1>, vector<2x128xf32>
    %202 = vector.extract_strided_slice %201 {offsets = [0, 0], sizes = [2, 32], strides = [1, 1]} : vector<2x128xf32> to vector<2x32xf32>
    %203 = vector.extract_strided_slice %201 {offsets = [0, 32], sizes = [2, 32], strides = [1, 1]} : vector<2x128xf32> to vector<2x32xf32>
    %204 = vector.extract_strided_slice %201 {offsets = [0, 64], sizes = [2, 32], strides = [1, 1]} : vector<2x128xf32> to vector<2x32xf32>
    %205 = vector.extract_strided_slice %201 {offsets = [0, 96], sizes = [2, 32], strides = [1, 1]} : vector<2x128xf32> to vector<2x32xf32>
    %206 = arith.mulf %203, %189 : vector<2x32xf32>
    %207 = arith.mulf %202, %204 : vector<2x32xf32>
    %208 = arith.addf %206, %207 : vector<2x32xf32>
    %209 = math.tanh %208 : vector<2x32xf32>
    %210 = arith.mulf %205, %209 : vector<2x32xf32>
    %211 = vector.extract_strided_slice %12 {offsets = [4, 0], sizes = [2, 128], strides = [1, 1]} : vector<16x128xf32> to vector<2x128xf32>
    %cst_33 = arith.constant dense<0.000000e+00> : vector<2x128xf32>
    %212 = tpu.matmul %210, %1, %cst_33 {dimension_numbers = #tpu.dot_dimension_numbers<[1], [0], [0], [1], [0, 0, 1, 1], [], []>} : vector<2x32xf32>, vector<32x128xf32>, vector<2x128xf32> -> vector<2x128xf32>
    %213 = arith.addf %211, %212 : vector<2x128xf32>
    %214 = math.tanh %213 : vector<2x128xf32>
    %215 = arith.negf %213 : vector<2x128xf32>
    %216 = math.exp %215 : vector<2x128xf32>
    %cst_34 = arith.constant 1.000000e+00 : f32
    %217 = vector.broadcast %cst_34 : f32 to vector<2x128xf32>
    %218 = arith.addf %217, %216 : vector<2x128xf32>
    %219 = arith.divf %217, %218 : vector<2x128xf32>
    %220 = arith.select %18, %214, %219 : vector<2x128xi1>, vector<2x128xf32>
    %221 = vector.extract_strided_slice %220 {offsets = [0, 0], sizes = [2, 32], strides = [1, 1]} : vector<2x128xf32> to vector<2x32xf32>
    %222 = vector.extract_strided_slice %220 {offsets = [0, 32], sizes = [2, 32], strides = [1, 1]} : vector<2x128xf32> to vector<2x32xf32>
    %223 = vector.extract_strided_slice %220 {offsets = [0, 64], sizes = [2, 32], strides = [1, 1]} : vector<2x128xf32> to vector<2x32xf32>
    %224 = vector.extract_strided_slice %220 {offsets = [0, 96], sizes = [2, 32], strides = [1, 1]} : vector<2x128xf32> to vector<2x32xf32>
    %225 = arith.mulf %222, %208 : vector<2x32xf32>
    %226 = arith.mulf %221, %223 : vector<2x32xf32>
    %227 = arith.addf %225, %226 : vector<2x32xf32>
    %228 = math.tanh %227 : vector<2x32xf32>
    %229 = arith.mulf %224, %228 : vector<2x32xf32>
    %230 = vector.extract_strided_slice %12 {offsets = [6, 0], sizes = [2, 128], strides = [1, 1]} : vector<16x128xf32> to vector<2x128xf32>
    %cst_35 = arith.constant dense<0.000000e+00> : vector<2x128xf32>
    %231 = tpu.matmul %229, %1, %cst_35 {dimension_numbers = #tpu.dot_dimension_numbers<[1], [0], [0], [1], [0, 0, 1, 1], [], []>} : vector<2x32xf32>, vector<32x128xf32>, vector<2x128xf32> -> vector<2x128xf32>
    %232 = arith.addf %230, %231 : vector<2x128xf32>
    %233 = math.tanh %232 : vector<2x128xf32>
    %234 = arith.negf %232 : vector<2x128xf32>
    %235 = math.exp %234 : vector<2x128xf32>
    %cst_36 = arith.constant 1.000000e+00 : f32
    %236 = vector.broadcast %cst_36 : f32 to vector<2x128xf32>
    %237 = arith.addf %236, %235 : vector<2x128xf32>
    %238 = arith.divf %236, %237 : vector<2x128xf32>
    %239 = arith.select %18, %233, %238 : vector<2x128xi1>, vector<2x128xf32>
    %240 = vector.extract_strided_slice %239 {offsets = [0, 0], sizes = [2, 32], strides = [1, 1]} : vector<2x128xf32> to vector<2x32xf32>
    %241 = vector.extract_strided_slice %239 {offsets = [0, 32], sizes = [2, 32], strides = [1, 1]} : vector<2x128xf32> to vector<2x32xf32>
    %242 = vector.extract_strided_slice %239 {offsets = [0, 64], sizes = [2, 32], strides = [1, 1]} : vector<2x128xf32> to vector<2x32xf32>
    %243 = vector.extract_strided_slice %239 {offsets = [0, 96], sizes = [2, 32], strides = [1, 1]} : vector<2x128xf32> to vector<2x32xf32>
    %244 = arith.mulf %241, %227 : vector<2x32xf32>
    %245 = arith.mulf %240, %242 : vector<2x32xf32>
    %246 = arith.addf %244, %245 : vector<2x32xf32>
    %247 = math.tanh %246 : vector<2x32xf32>
    %248 = arith.mulf %243, %247 : vector<2x32xf32>
    %249 = vector.extract_strided_slice %12 {offsets = [8, 0], sizes = [2, 128], strides = [1, 1]} : vector<16x128xf32> to vector<2x128xf32>
    %cst_37 = arith.constant dense<0.000000e+00> : vector<2x128xf32>
    %250 = tpu.matmul %248, %1, %cst_37 {dimension_numbers = #tpu.dot_dimension_numbers<[1], [0], [0], [1], [0, 0, 1, 1], [], []>} : vector<2x32xf32>, vector<32x128xf32>, vector<2x128xf32> -> vector<2x128xf32>
    %251 = arith.addf %249, %250 : vector<2x128xf32>
    %252 = math.tanh %251 : vector<2x128xf32>
    %253 = arith.negf %251 : vector<2x128xf32>
    %254 = math.exp %253 : vector<2x128xf32>
    %cst_38 = arith.constant 1.000000e+00 : f32
    %255 = vector.broadcast %cst_38 : f32 to vector<2x128xf32>
    %256 = arith.addf %255, %254 : vector<2x128xf32>
    %257 = arith.divf %255, %256 : vector<2x128xf32>
    %258 = arith.select %18, %252, %257 : vector<2x128xi1>, vector<2x128xf32>
    %259 = vector.extract_strided_slice %258 {offsets = [0, 0], sizes = [2, 32], strides = [1, 1]} : vector<2x128xf32> to vector<2x32xf32>
    %260 = vector.extract_strided_slice %258 {offsets = [0, 32], sizes = [2, 32], strides = [1, 1]} : vector<2x128xf32> to vector<2x32xf32>
    %261 = vector.extract_strided_slice %258 {offsets = [0, 64], sizes = [2, 32], strides = [1, 1]} : vector<2x128xf32> to vector<2x32xf32>
    %262 = vector.extract_strided_slice %258 {offsets = [0, 96], sizes = [2, 32], strides = [1, 1]} : vector<2x128xf32> to vector<2x32xf32>
    %263 = arith.mulf %260, %246 : vector<2x32xf32>
    %264 = arith.mulf %259, %261 : vector<2x32xf32>
    %265 = arith.addf %263, %264 : vector<2x32xf32>
    %266 = math.tanh %265 : vector<2x32xf32>
    %267 = arith.mulf %262, %266 : vector<2x32xf32>
    %268 = vector.extract_strided_slice %12 {offsets = [10, 0], sizes = [2, 128], strides = [1, 1]} : vector<16x128xf32> to vector<2x128xf32>
    %cst_39 = arith.constant dense<0.000000e+00> : vector<2x128xf32>
    %269 = tpu.matmul %267, %1, %cst_39 {dimension_numbers = #tpu.dot_dimension_numbers<[1], [0], [0], [1], [0, 0, 1, 1], [], []>} : vector<2x32xf32>, vector<32x128xf32>, vector<2x128xf32> -> vector<2x128xf32>
    %270 = arith.addf %268, %269 : vector<2x128xf32>
    %271 = math.tanh %270 : vector<2x128xf32>
    %272 = arith.negf %270 : vector<2x128xf32>
    %273 = math.exp %272 : vector<2x128xf32>
    %cst_40 = arith.constant 1.000000e+00 : f32
    %274 = vector.broadcast %cst_40 : f32 to vector<2x128xf32>
    %275 = arith.addf %274, %273 : vector<2x128xf32>
    %276 = arith.divf %274, %275 : vector<2x128xf32>
    %277 = arith.select %18, %271, %276 : vector<2x128xi1>, vector<2x128xf32>
    %278 = vector.extract_strided_slice %277 {offsets = [0, 0], sizes = [2, 32], strides = [1, 1]} : vector<2x128xf32> to vector<2x32xf32>
    %279 = vector.extract_strided_slice %277 {offsets = [0, 32], sizes = [2, 32], strides = [1, 1]} : vector<2x128xf32> to vector<2x32xf32>
    %280 = vector.extract_strided_slice %277 {offsets = [0, 64], sizes = [2, 32], strides = [1, 1]} : vector<2x128xf32> to vector<2x32xf32>
    %281 = vector.extract_strided_slice %277 {offsets = [0, 96], sizes = [2, 32], strides = [1, 1]} : vector<2x128xf32> to vector<2x32xf32>
    %282 = arith.mulf %279, %265 : vector<2x32xf32>
    %283 = arith.mulf %278, %280 : vector<2x32xf32>
    %284 = arith.addf %282, %283 : vector<2x32xf32>
    %285 = math.tanh %284 : vector<2x32xf32>
    %286 = arith.mulf %281, %285 : vector<2x32xf32>
    %287 = vector.extract_strided_slice %12 {offsets = [12, 0], sizes = [2, 128], strides = [1, 1]} : vector<16x128xf32> to vector<2x128xf32>
    %cst_41 = arith.constant dense<0.000000e+00> : vector<2x128xf32>
    %288 = tpu.matmul %286, %1, %cst_41 {dimension_numbers = #tpu.dot_dimension_numbers<[1], [0], [0], [1], [0, 0, 1, 1], [], []>} : vector<2x32xf32>, vector<32x128xf32>, vector<2x128xf32> -> vector<2x128xf32>
    %289 = arith.addf %287, %288 : vector<2x128xf32>
    %290 = math.tanh %289 : vector<2x128xf32>
    %291 = arith.negf %289 : vector<2x128xf32>
    %292 = math.exp %291 : vector<2x128xf32>
    %cst_42 = arith.constant 1.000000e+00 : f32
    %293 = vector.broadcast %cst_42 : f32 to vector<2x128xf32>
    %294 = arith.addf %293, %292 : vector<2x128xf32>
    %295 = arith.divf %293, %294 : vector<2x128xf32>
    %296 = arith.select %18, %290, %295 : vector<2x128xi1>, vector<2x128xf32>
    %297 = vector.extract_strided_slice %296 {offsets = [0, 0], sizes = [2, 32], strides = [1, 1]} : vector<2x128xf32> to vector<2x32xf32>
    %298 = vector.extract_strided_slice %296 {offsets = [0, 32], sizes = [2, 32], strides = [1, 1]} : vector<2x128xf32> to vector<2x32xf32>
    %299 = vector.extract_strided_slice %296 {offsets = [0, 64], sizes = [2, 32], strides = [1, 1]} : vector<2x128xf32> to vector<2x32xf32>
    %300 = vector.extract_strided_slice %296 {offsets = [0, 96], sizes = [2, 32], strides = [1, 1]} : vector<2x128xf32> to vector<2x32xf32>
    %301 = arith.mulf %298, %284 : vector<2x32xf32>
    %302 = arith.mulf %297, %299 : vector<2x32xf32>
    %303 = arith.addf %301, %302 : vector<2x32xf32>
    %304 = math.tanh %303 : vector<2x32xf32>
    %305 = arith.mulf %300, %304 : vector<2x32xf32>
    %306 = vector.extract_strided_slice %12 {offsets = [14, 0], sizes = [2, 128], strides = [1, 1]} : vector<16x128xf32> to vector<2x128xf32>
    %cst_43 = arith.constant dense<0.000000e+00> : vector<2x128xf32>
    %307 = tpu.matmul %305, %1, %cst_43 {dimension_numbers = #tpu.dot_dimension_numbers<[1], [0], [0], [1], [0, 0, 1, 1], [], []>} : vector<2x32xf32>, vector<32x128xf32>, vector<2x128xf32> -> vector<2x128xf32>
    %308 = arith.addf %306, %307 : vector<2x128xf32>
    %309 = math.tanh %308 : vector<2x128xf32>
    %310 = arith.negf %308 : vector<2x128xf32>
    %311 = math.exp %310 : vector<2x128xf32>
    %cst_44 = arith.constant 1.000000e+00 : f32
    %312 = vector.broadcast %cst_44 : f32 to vector<2x128xf32>
    %313 = arith.addf %312, %311 : vector<2x128xf32>
    %314 = arith.divf %312, %313 : vector<2x128xf32>
    %315 = arith.select %18, %309, %314 : vector<2x128xi1>, vector<2x128xf32>
    %316 = vector.extract_strided_slice %315 {offsets = [0, 0], sizes = [2, 32], strides = [1, 1]} : vector<2x128xf32> to vector<2x32xf32>
    %317 = vector.extract_strided_slice %315 {offsets = [0, 32], sizes = [2, 32], strides = [1, 1]} : vector<2x128xf32> to vector<2x32xf32>
    %318 = vector.extract_strided_slice %315 {offsets = [0, 64], sizes = [2, 32], strides = [1, 1]} : vector<2x128xf32> to vector<2x32xf32>
    %319 = vector.extract_strided_slice %315 {offsets = [0, 96], sizes = [2, 32], strides = [1, 1]} : vector<2x128xf32> to vector<2x32xf32>
    %320 = arith.mulf %317, %303 : vector<2x32xf32>
    %321 = arith.mulf %316, %318 : vector<2x32xf32>
    %322 = arith.addf %320, %321 : vector<2x32xf32>
    %323 = math.tanh %322 : vector<2x32xf32>
    %324 = arith.mulf %319, %323 : vector<2x32xf32>
    %325 = tpu.concatenate %191, %210, %229, %248, %267, %286, %305, %324 in 0 : vector<2x32xf32>, vector<2x32xf32>, vector<2x32xf32>, vector<2x32xf32>, vector<2x32xf32>, vector<2x32xf32>, vector<2x32xf32>, vector<2x32xf32> -> vector<16x32xf32>
    %c0_45 = arith.constant 0 : index
    %c0_46 = arith.constant 0 : index
    %326 = vector.load %arg6[%c0_45, %c0_46] : memref<32x128xf32, #tpu.memory_space<vmem>>, vector<32x128xf32>
    %cst_47 = arith.constant dense<0.000000e+00> : vector<16x128xf32>
    %327 = tpu.matmul %325, %326, %cst_47 {dimension_numbers = #tpu.dot_dimension_numbers<[1], [0], [0], [1], [0, 0, 1, 1], [], []>} : vector<16x32xf32>, vector<32x128xf32>, vector<16x128xf32> -> vector<16x128xf32>
    %c0_48 = arith.constant 0 : index
    %c0_49 = arith.constant 0 : index
    %328 = vector.load %arg7[%c0_48, %c0_49] : memref<1x128xf32, #tpu.memory_space<vmem>>, vector<1x128xf32>
    %329 = vector.broadcast %328 : vector<1x128xf32> to vector<16x128xf32>
    %330 = arith.addf %327, %329 : vector<16x128xf32>
    %c0_50 = arith.constant 0 : index
    %c0_51 = arith.constant 0 : index
    %331 = vector.load %arg8[%c0_50, %c0_51] : memref<16x128xf32, #tpu.memory_space<vmem>>, vector<16x128xf32>
    tpu.vector_store %arg8[%c0_50, %c0_51], %330 {strides = array<i32>} : memref<16x128xf32, #tpu.memory_space<vmem>>, vector<16x128xf32>,
    return
  }
}

</mosaic_0001>

<bundles_post_ra>
// kernel: tpu_custom_call.1
= control target key start
LH: loop header
LB: loop body
LE: loop exit
PB: predicated region body
PF: predicated region fallthrough
CT: control target
= control target key end

     0   :  { %13 = vsyncpa [#allocation3], 0  ;;  %s2024_s0 = inlined_call_operand.hbm [shape: f32[32,32], index: 0, kind: input, shape index: {}]   ;;  %s2025_s1 = inlined_call_operand.hbm [shape: f32[32,128], index: 1, kind: input, shape index: {}]   ;;  %s2026_s2 = inlined_call_operand.vmem [shape: f32[1,128], index: 2, kind: input, shape index: {}]   ;;  %s2027_s3 = inlined_call_operand.vmem [shape: f32[1,128], index: 3, kind: input, shape index: {}]   ;;  %s2028_s4 = inlined_call_operand.hbm [shape: f32[32,128], index: 4, kind: input, shape index: {}]   ;;  %s2029_s5 = inlined_call_operand.hbm [shape: f32[32,128], index: 5, kind: input, shape index: {}]   ;;  %s2030_s6 = inlined_call_operand.hbm [shape: f32[32,128], index: 6, kind: input, shape index: {}]   ;;  %s2031_s7 = inlined_call_operand.vmem [shape: f32[1,128], index: 7, kind: input, shape index: {}]   ;;  %s2032_s8 = inlined_call_operand.hbm [shape: f32[16,128], index: 8, kind: output, shape index: {}]  }
   0x1   :  { %14 = vsyncpa [#allocation6], 0 }
   0x2   :  { %15 = vsyncpa [#allocation9], 0 }
   0x3   :  { %16 = vsyncpa [#allocation4], 0  ;;  %s34_s29 = sshll.u32 %s2025_s1, 4  ;;  %s1705_s30 = smov [#allocation5]   ;;  %s35_s29 = int_to_ptr.hbm [resolvable:$true] %s34_s29 }
   0x4   :  { %s36_s9 = sshll.u32 %s1705_s30, 4  ;;  %s64_s12 = sshll.u32 %s2029_s5, 4  ;;  %s37_s9 = int_to_ptr.vmem [resolvable:$true] %s36_s9  ;;  %s65_s12 = int_to_ptr.hbm [resolvable:$true] %s64_s12 }
   0x5   :  { %s1706_s13 = smov 128   ;;  %s1707_s14 = smov 8  }
   0x6   :  { %42 = dma.hbm_to_vmem [thread:$0]  %s35_s29, 512, %s37_s9, [#allocation6], %s1706_s13, %s1706_s13, %s1707_s14  }
   0x7   :  { %s1708_s15 = smov [#allocation8]   ;;  %s21_s1 = sshll.u32 %s2024_s0, 4  ;;  %s22_s1 = int_to_ptr.hbm [resolvable:$true] %s21_s1 }
   0x8   :  { %s66_s16 = sshll.u32 %s1708_s15, 4  ;;  %s51_s20 = sshll.u32 %s2028_s4, 4  ;;  %s67_s16 = int_to_ptr.vmem [resolvable:$true] %s66_s16  ;;  %s52_s20 = int_to_ptr.hbm [resolvable:$true] %s51_s20 }
   0x9   :  { %72 = dma.hbm_to_vmem [thread:$0]  %s65_s12, 512, %s67_s16, [#allocation9], %s1706_s13, %s1706_s13, %s1707_s14  }
   0xa   :  { %s1709_s21 = smov [#allocation2]   ;;  %s1710_s23 = smov [#allocation7]  }
   0xb   :  { %s23_s22 = sshll.u32 %s1709_s21, 4  ;;  %s53_s0 = sshll.u32 %s1710_s23, 4  ;;  %s24_s22 = int_to_ptr.vmem [resolvable:$true] %s23_s22  ;;  %s54_s0 = int_to_ptr.vmem [resolvable:$true] %s53_s0 }
   0xc   :  { %29 = dma.hbm_to_vmem [thread:$0]  %s22_s1, 512, %s24_s22, [#allocation3], %s1706_s13, %s1706_s13, %s1707_s14  }
   0xd   :  { %s77_s26 = sshll.u32 %s2030_s6, 4  ;;  %s1711_s4 = smov [#allocation10]   ;;  %s78_s26 = int_to_ptr.hbm [resolvable:$true] %s77_s26 }
   0xe   :  { %59 = dma.hbm_to_vmem [thread:$0]  %s52_s20, 512, %s54_s0, [#allocation6], %s1706_s13, %s1706_s13, %s1707_s14  }
   0xf   :  { %s79_s27 = sshll.u32 %s1711_s4, 4  ;;  %s80_s27 = int_to_ptr.vmem [resolvable:$true] %s79_s27 }
  0x10   :  { %85 = dma.hbm_to_vmem [thread:$0]  %s78_s26, 512, %s80_s27, [#allocation9], %s1706_s13, %s1706_s13, %s1707_s14  }
  0x11   :  { %1697 = dma.done.wait [#allocation3], 512  }
  0x12   :  { %1698 = vsyncadd [#allocation3], 4294966784 }
  0x13   :  { %1699 = dma.done.wait [#allocation6], 1024  }
  0x14   :  { %1700 = vsyncadd [#allocation6], 4294966272 }
  0x15   :  { %1701 = dma.done.wait [#allocation9], 1024  }
  0x16   :  { %1702 = vsyncadd [#allocation9], 4294966272  ;;  %v123_v0 = vld [vmem:[#allocation5 + $0x18] sm:$0xff]  ;;  %v122_v1 = vld [vmem:[#allocation5 + $0x10] sm:$0xff]  ;;  %vm124_vm0 = vcmask 261120   ;;  %v1712_v10 = vmov 0.0   ;;  %v178_v20 = vlaneseq }
  0x17   :  { %1407 = vmatpush.msra.mxu1 %v123_v0  ;;  %149 = vmatpush.msra.mxu0 %v123_v0  ;;  %v1791_v2 = vld [vmem:[#allocation7 + $0x18] sm:$0xff]  ;;  %v121_v3 = vld [vmem:[#allocation5 + $0x8] sm:$0xff]  ;;  %v1795_v4 = vld [vmem:[#allocation7 + $0x10] sm:$0xff]  ;;  %s1714_s29 = smov 32   ;;  %s1715_s11 = smov [#allocation11]  }
  0x18   :  { %262 = vmatpush.msra.mxu2 %v1791_v2  ;;  %333 = vmatpush.msra.mxu3 %v1791_v2  ;;  %v120_v5 = vld [vmem:[#allocation5] sm:$0xff]  ;;  %v119_v6 = vld [vmem:[#allocation2 + $0x18] sm:$0xff]  ;;  %v1799_v7 = vld [vmem:[#allocation7 + $0x8] sm:$0xff]  ;;  %v179_v22 = vand.u32 127, %v178_v20  ;;  %s1353_s12 = sshll.u32 %s1715_s11, 4  ;;  %s1355_s17 = sshll.u32 %s2032_s8, 4  ;;  %s1354_s12 = int_to_ptr.vmem [resolvable:$true] %s1353_s12  ;;  %s1356_s17 = int_to_ptr.hbm [resolvable:$true] %s1355_s17 }
  0x19   :  { %1408 = vmatpush.msra.mxu1 %v122_v1  ;;  %150 = vmatpush.msra.mxu0 %v122_v1  ;;  %v116_v8 = vld [vmem:[#allocation2] sm:$0xff] }
  0x1a   :  { %263 = vmatpush.msra.mxu2 %v1795_v4  ;;  %334 = vmatpush.msra.mxu3 %v1795_v4  ;;  %v1805_v9 = vld [vmem:[#allocation7] sm:$0xff]  ;;  %vm180_vm1 = vcmp.ge.s32.totalorder %v179_v22, 64  ;;  %vm181_vm2 = vcmp.lt.s32.totalorder %v179_v22, 96 }
  0x1b   :  { %1409 = vmatpush.msra.mxu1 %v121_v3  ;;  %151 = vmatpush.msra.mxu0 %v121_v3  ;;  %v1834_v12 = vld [vmem:[%s2026_s2] ss:$0 sm:$0xff]  ;;  %vm1840_vm4 = vmand %vm180_vm1, %vm181_vm2  ;;  %s1713_s2 = smov 64  }
  0x1c   :  { %264 = vmatpush.msra.mxu2 %v1799_v7  ;;  %335 = vmatpush.msra.mxu3 %v1799_v7 }
  0x1d   :  { %1410 = vmatpush.msra.mxu1 %v120_v5  ;;  %152 = vmatpush.msra.mxu0 %v120_v5 }
  0x1e   :  { %1373 = vmatmul.msk.f32.vlgmr.msra.gmra.mxu1 %vm124_vm0, %v119_v6  ;;  %1370 = vmatmul.msk.f32.vlgmr.msra.gmra.mxu0 %vm124_vm0, %v116_v8 }
  0x1f   :  { %198 = vmatpush.msrb.mxu1 %v1791_v2  ;;  %265 = vmatpush.msra.mxu2 %v1805_v9 }
  0x20   :  { %336 = vmatpush.msra.mxu3 %v1805_v9 }
  0x21   :  { %475 = vmatpush.msrb.mxu2 %v1791_v2  ;;  %199 = vmatpush.msrb.mxu1 %v1795_v4 }
  0x22   :  { %542 = vmatpush.msrb.mxu3 %v1791_v2 }
  0x23   :  { %476 = vmatpush.msrb.mxu2 %v1795_v4  ;;  %200 = vmatpush.msrb.mxu1 %v1799_v7 }
  0x24   :  { %543 = vmatpush.msrb.mxu3 %v1795_v4 }
  0x25   :  { %477 = vmatpush.msrb.mxu2 %v1799_v7  ;;  %201 = vmatpush.msrb.mxu1 %v1805_v9 }
  0x26   :  { %544 = vmatpush.msrb.mxu3 %v1799_v7  ;;  %202 = vmatmul.f32.vlgmr.msrb.gmra.mxu1 %v1712_v10 }
  0x27   :  { %478 = vmatpush.msrb.mxu2 %v1805_v9  ;;  %404 = vmatpush.msra.mxu1 %v1791_v2 }
  0x28   :  { %545 = vmatpush.msrb.mxu3 %v1805_v9 }
  0x29   :  { %405 = vmatpush.msra.mxu1 %v1795_v4 }
  0x2b   :  { %406 = vmatpush.msra.mxu1 %v1799_v7 }
  0x2d   :  { %407 = vmatpush.msra.mxu1 %v1805_v9 }
  0x2f   :  { %613 = vmatpush.msrb.mxu1 %v1791_v2 }
  0x31   :  { %614 = vmatpush.msrb.mxu1 %v1795_v4 }
  0x33   :  { %615 = vmatpush.msrb.mxu1 %v1799_v7 }
  0x35   :  { %616 = vmatpush.msrb.mxu1 %v1805_v9 }
  0x9b   :  { %v1829_v11 = vpop.f32.mrf.mxu1  ;;  %v154_v13 = vpop.f32.mrf.mxu0 }
  0x9c   :  { %v1837_v14 = vadd.f32 %v1834_v12, %v154_v13 }
  0xa3   :  { %v203_v15 = vpop.f32.mrf.mxu1 }
  0xa4   :  { %v206_v16 = vadd.f32 %v203_v15, %v1837_v14 }
  0xa6   :  { %v1374_v17 = vmul.f32 -1.442695, %v206_v16 }
  0xa8   :  { %1425 = vpow2.f32 %v1374_v17 }
  0xae   :  { %v1426_v18 = vpop.eup %1425 }
  0xaf   :  { %v211_v19 = vadd.f32 1.0, %v1426_v18 }
  0xb1   :  { %1427 = vrcp.f32 %v211_v19  ;;  %v223_v25 = vand.u32 2147483648, %v211_v19  ;;  %v221_v27 = vand.u32 2147483647, %v211_v19  ;;  %vm217_vm5 = vweird.f32 %v211_v19 }
  0xb2   :  { %1429 = vtanh.f32 %v206_v16 }
  0xb3   :  { %v224_v30 = vor.u32 1.1754944e-38, %v223_v25  ;;  %vm222_vm7 = vcmp.eq.f32.partialorder %v221_v27, 8.507059e+37 }
  0xb7   :  { %v1428_v21 = vpop.eup %1427 }
  0xb8   :  { %v213_v23 = vmul.f32 %v1428_v21, %v211_v19  ;;  %vm218_vm3 = vweird.f32 %v1428_v21  ;;  %v1430_v32 = vpop.eup %1429 }
  0xb9   :  { %vm219_vm6 = vmor %vm217_vm5, %vm218_vm3 }
  0xba   :  { %v214_v24 = vsub.f32 1.0, %v213_v23 }
  0xbc   :  { %v215_v26 = vmul.f32 %v1428_v21, %v214_v24 }
  0xbe   :  { %v216_v29 = vadd.f32 %v1428_v21, %v215_v26 }
  0xc0   :  { %v220_v31 = vsel %vm219_vm6, %v1428_v21, %v216_v29 }
  0xc1   :  { %v225_v33 = vsel %vm222_vm7, %v224_v30, %v220_v31 }
  0xc2   :  { %v227_v34 = vsel %vm1840_vm4, %v1430_v32, %v225_v33 }
  0xc3   :  { %230 = vrot.lane.b32.xlu0 %v227_v34, %s1713_s2  ;;  %v228_v37 = vmul.f32 0.0, %v227_v34 }
 0x135   :  { %v231_v35 = vpop.permute.xlu0 %230 }
 0x136   :  { %v233_v36 = vmul.f32 %v231_v35, %v227_v34 }
 0x138   :  { %235 = vrot.lane.b32.xlu0 %v233_v36, %s1714_s29 }
 0x1aa   :  { %v236_v38 = vpop.permute.xlu0 %235 }
 0x1ab   :  { %v238_v39 = vadd.f32 %v236_v38, %v228_v37 }
 0x1ad   :  { %1431 = vtanh.f32 %v238_v39  ;;  %v296_v0 = vrot.slane %v238_v39, 6 }
 0x1b3   :  { %v1432_v40 = vpop.eup %1431 }
 0x1b4   :  { %241 = vrot.lane.b32.xlu1 %v1432_v40, %s1713_s2 }
 0x226   :  { %v242_v41 = vpop.permute.xlu1 %241 }
 0x227   :  { %v244_v42 = vmul.f32 %v242_v41, %v227_v34 }
 0x229   :  { %246 = vrot.lane.b32.xlu1 %v244_v42, %s1714_s29 }
 0x29b   :  { %v247_v43 = vpop.permute.xlu1 %246 }
 0x29c   :  { %1375 = vmatmul.msk.f32.vlgmr.msra.gmra.mxu2 %vm124_vm0, %v247_v43 }
 0x29d   :  { %684 = vmatpush.msra.mxu2 %v1791_v2 }
 0x29f   :  { %685 = vmatpush.msra.mxu2 %v1795_v4 }
 0x2a1   :  { %686 = vmatpush.msra.mxu2 %v1799_v7 }
 0x2a3   :  { %687 = vmatpush.msra.mxu2 %v1805_v9 }
 0x31f   :  { %v267_v44 = vpop.f32.mrf.mxu2 }
 0x320   :  { %v271_v45 = vrot.slane %v267_v44, 6 }
 0x322   :  { %v273_v46 = vadd.f32 %v271_v45, %v1837_v14 }
 0x324   :  { %v1376_v47 = vmul.f32 -1.442695, %v273_v46 }
 0x326   :  { %1433 = vpow2.f32 %v1376_v47 }
 0x32c   :  { %v1434_v48 = vpop.eup %1433 }
 0x32d   :  { %v278_v49 = vadd.f32 1.0, %v1434_v48 }
 0x32f   :  { %1435 = vrcp.f32 %v278_v49  ;;  %v290_v53 = vand.u32 2147483648, %v278_v49  ;;  %v288_v55 = vand.u32 2147483647, %v278_v49  ;;  %vm284_vm9 = vweird.f32 %v278_v49 }
 0x330   :  { %1437 = vtanh.f32 %v273_v46 }
 0x331   :  { %v291_v57 = vor.u32 1.1754944e-38, %v290_v53  ;;  %vm289_vm11 = vcmp.eq.f32.partialorder %v288_v55, 8.507059e+37 }
 0x335   :  { %v1436_v50 = vpop.eup %1435 }
 0x336   :  { %v280_v51 = vmul.f32 %v1436_v50, %v278_v49  ;;  %vm285_vm8 = vweird.f32 %v1436_v50  ;;  %v1438_v59 = vpop.eup %1437 }
 0x337   :  { %vm286_vm10 = vmor %vm284_vm9, %vm285_vm8 }
 0x338   :  { %v281_v52 = vsub.f32 1.0, %v280_v51 }
 0x33a   :  { %v282_v54 = vmul.f32 %v1436_v50, %v281_v52 }
 0x33c   :  { %v283_v56 = vadd.f32 %v1436_v50, %v282_v54 }
 0x33e   :  { %v287_v58 = vsel %vm286_vm10, %v1436_v50, %v283_v56 }
 0x33f   :  { %v292_v60 = vsel %vm289_vm11, %v291_v57, %v287_v58 }
 0x340   :  { %v294_v61 = vsel %vm1840_vm4, %v1438_v59, %v292_v60 }
 0x341   :  { %300 = vrot.lane.b32.xlu2 %v294_v61, %s1713_s2  ;;  %v298_v1 = vmul.f32 %v296_v0, %v294_v61 }
 0x39b   :  { %v301_v62 = vpop.permute.xlu2 %300 }
 0x39c   :  { %v303_v63 = vmul.f32 %v301_v62, %v294_v61 }
 0x39e   :  { %305 = vrot.lane.b32.xlu2 %v303_v63, %s1714_s29 }
 0x3f8   :  { %v306_v2 = vpop.permute.xlu2 %305 }
 0x3f9   :  { %v308_v3 = vadd.f32 %v306_v2, %v298_v1 }
 0x3fb   :  { %1439 = vtanh.f32 %v308_v3  ;;  %v367_v33 = vrot.slane %v308_v3, 6 }
 0x401   :  { %v1440_v4 = vpop.eup %1439 }
 0x402   :  { %311 = vrot.lane.b32.xlu0 %v1440_v4, %s1713_s2 }
 0x474   :  { %v312_v5 = vpop.permute.xlu0 %311 }
 0x475   :  { %v314_v6 = vmul.f32 %v312_v5, %v294_v61  ;;  %v117_v5 = vld [vmem:[#allocation2 + $0x8] sm:$0xff] }
 0x476   :  { %1371 = vmatmul.msk.f32.gmra.mxu0 %vm124_vm0, %v117_v5 }
 0x477   :  { %v316_v7 = vrot.slane %v314_v6, 2 }
 0x479   :  { %317 = vrot.lane.b32.xlu1 %v316_v7, %s1714_s29 }
 0x4eb   :  { %v318_v8 = vpop.permute.xlu1 %317 }
 0x4ec   :  { %1377 = vmatmul.msk.f32.vlgmr.msra.gmra.mxu3 %vm124_vm0, %v318_v8 }
 0x4f3   :  { %v157_v7 = vpop.f32.mrf.mxu0 }
 0x4f4   :  { %v1881_v8 = vadd.f32 %v1834_v12, %v157_v7 }
 0x56f   :  { %v338_v9 = vpop.f32.mrf.mxu3 }
 0x570   :  { %v342_v10 = vrot.slane %v338_v9, 4 }
 0x572   :  { %v344_v13 = vadd.f32 %v342_v10, %v1837_v14 }
 0x574   :  { %v1378_v15 = vmul.f32 -1.442695, %v344_v13 }
 0x576   :  { %1441 = vpow2.f32 %v1378_v15 }
 0x57c   :  { %v1442_v16 = vpop.eup %1441 }
 0x57d   :  { %v349_v17 = vadd.f32 1.0, %v1442_v16 }
 0x57f   :  { %1443 = vrcp.f32 %v349_v17  ;;  %v361_v21 = vand.u32 2147483648, %v349_v17  ;;  %v359_v23 = vand.u32 2147483647, %v349_v17  ;;  %vm355_vm13 = vweird.f32 %v349_v17 }
 0x580   :  { %1445 = vtanh.f32 %v344_v13 }
 0x581   :  { %v362_v25 = vor.u32 1.1754944e-38, %v361_v21  ;;  %vm360_vm15 = vcmp.eq.f32.partialorder %v359_v23, 8.507059e+37 }
 0x585   :  { %v1444_v18 = vpop.eup %1443 }
 0x586   :  { %v351_v19 = vmul.f32 %v1444_v18, %v349_v17  ;;  %vm356_vm12 = vweird.f32 %v1444_v18  ;;  %v1446_v27 = vpop.eup %1445 }
 0x587   :  { %vm357_vm14 = vmor %vm355_vm13, %vm356_vm12 }
 0x588   :  { %v352_v20 = vsub.f32 1.0, %v351_v19 }
 0x58a   :  { %v353_v22 = vmul.f32 %v1444_v18, %v352_v20 }
 0x58c   :  { %v354_v24 = vadd.f32 %v1444_v18, %v353_v22 }
 0x58e   :  { %v358_v26 = vsel %vm357_vm14, %v1444_v18, %v354_v24 }
 0x58f   :  { %v363_v29 = vsel %vm360_vm15, %v362_v25, %v358_v26 }
 0x590   :  { %v365_v30 = vsel %vm1840_vm4, %v1446_v27, %v363_v29 }
 0x591   :  { %371 = vrot.lane.b32.xlu2 %v365_v30, %s1713_s2  ;;  %v369_v34 = vmul.f32 %v367_v33, %v365_v30 }
 0x5eb   :  { %v372_v31 = vpop.permute.xlu2 %371 }
 0x5ec   :  { %v374_v32 = vmul.f32 %v372_v31, %v365_v30 }
 0x5ee   :  { %376 = vrot.lane.b32.xlu0 %v374_v32, %s1714_s29 }
 0x660   :  { %v377_v35 = vpop.permute.xlu0 %376 }
 0x661   :  { %v379_v36 = vadd.f32 %v377_v35, %v369_v34 }
 0x663   :  { %1447 = vtanh.f32 %v379_v36  ;;  %v438_v61 = vrot.slane %v379_v36, 6 }
 0x669   :  { %v1448_v37 = vpop.eup %1447 }
 0x66a   :  { %382 = vrot.lane.b32.xlu1 %v1448_v37, %s1713_s2 }
 0x6dc   :  { %v383_v38 = vpop.permute.xlu1 %382 }
 0x6dd   :  { %v385_v39 = vmul.f32 %v383_v38, %v365_v30 }
 0x6df   :  { %v387_v40 = vrot.slane %v385_v39, 4 }
 0x6e1   :  { %388 = vrot.lane.b32.xlu2 %v387_v40, %s1714_s29 }
 0x73b   :  { %v389_v41 = vpop.permute.xlu2 %388 }
 0x73c   :  { %1379 = vmatmul.msk.f32.vlgmr.msra.gmra.mxu1 %vm124_vm0, %v389_v41 }
 0x7b9   :  { %v409_v42 = vpop.f32.mrf.mxu1 }
 0x7ba   :  { %v413_v43 = vrot.slane %v409_v42, 2 }
 0x7bc   :  { %v415_v44 = vadd.f32 %v413_v43, %v1837_v14 }
 0x7be   :  { %v1380_v45 = vmul.f32 -1.442695, %v415_v44 }
 0x7c0   :  { %1449 = vpow2.f32 %v1380_v45 }
 0x7c6   :  { %v1450_v46 = vpop.eup %1449 }
 0x7c7   :  { %v420_v47 = vadd.f32 1.0, %v1450_v46 }
 0x7c9   :  { %1451 = vrcp.f32 %v420_v47  ;;  %v432_v51 = vand.u32 2147483648, %v420_v47  ;;  %v430_v53 = vand.u32 2147483647, %v420_v47  ;;  %vm426_vm2 = vweird.f32 %v420_v47 }
 0x7ca   :  { %1453 = vtanh.f32 %v415_v44 }
 0x7cb   :  { %v433_v55 = vor.u32 1.1754944e-38, %v432_v51  ;;  %vm431_vm5 = vcmp.eq.f32.partialorder %v430_v53, 8.507059e+37 }
 0x7cf   :  { %v1452_v48 = vpop.eup %1451 }
 0x7d0   :  { %v422_v49 = vmul.f32 %v1452_v48, %v420_v47  ;;  %vm427_vm1 = vweird.f32 %v1452_v48  ;;  %v1454_v14 = vpop.eup %1453 }
 0x7d1   :  { %vm428_vm3 = vmor %vm426_vm2, %vm427_vm1 }
 0x7d2   :  { %v423_v50 = vsub.f32 1.0, %v422_v49 }
 0x7d4   :  { %v424_v52 = vmul.f32 %v1452_v48, %v423_v50 }
 0x7d6   :  { %v425_v54 = vadd.f32 %v1452_v48, %v424_v52 }
 0x7d8   :  { %v429_v56 = vsel %vm428_vm3, %v1452_v48, %v425_v54 }
 0x7d9   :  { %v434_v57 = vsel %vm431_vm5, %v433_v55, %v429_v56 }
 0x7da   :  { %v436_v58 = vsel %vm1840_vm4, %v1454_v14, %v434_v57 }
 0x7db   :  { %442 = vrot.lane.b32.xlu0 %v436_v58, %s1713_s2  ;;  %v440_v62 = vmul.f32 %v438_v61, %v436_v58 }
 0x84d   :  { %v443_v59 = vpop.permute.xlu0 %442 }
 0x84e   :  { %v445_v60 = vmul.f32 %v443_v59, %v436_v58 }
 0x850   :  { %447 = vrot.lane.b32.xlu1 %v445_v60, %s1714_s29 }
 0x8c2   :  { %v448_v63 = vpop.permute.xlu1 %447 }
 0x8c3   :  { %v450_v0 = vadd.f32 %v448_v63, %v440_v62 }
 0x8c5   :  { %1455 = vtanh.f32 %v450_v0  ;;  %v506_v31 = vrot.slane %v450_v0, 6 }
 0x8cb   :  { %v1456_v1 = vpop.eup %1455 }
 0x8cc   :  { %453 = vrot.lane.b32.xlu2 %v1456_v1, %s1713_s2 }
 0x926   :  { %v454_v2 = vpop.permute.xlu2 %453 }
 0x927   :  { %v456_v3 = vmul.f32 %v454_v2, %v436_v58 }
 0x929   :  { %v458_v4 = vrot.slane %v456_v3, 6 }
 0x92b   :  { %459 = vrot.lane.b32.xlu0 %v458_v4, %s1714_s29 }
 0x99d   :  { %v460_v6 = vpop.permute.xlu0 %459 }
 0x99e   :  { %1381 = vmatmul.msk.f32.vlgmr.msrb.gmra.mxu2 %vm124_vm0, %v460_v6 }
 0xa21   :  { %v480_v9 = vpop.f32.mrf.mxu2 }
 0xa22   :  { %v483_v10 = vadd.f32 %v480_v9, %v1881_v8 }
 0xa24   :  { %v1382_v13 = vmul.f32 -1.442695, %v483_v10 }
 0xa26   :  { %1457 = vpow2.f32 %v1382_v13 }
 0xa2c   :  { %v1458_v15 = vpop.eup %1457 }
 0xa2d   :  { %v488_v16 = vadd.f32 1.0, %v1458_v15 }
 0xa2f   :  { %1459 = vrcp.f32 %v488_v16  ;;  %v500_v20 = vand.u32 2147483648, %v488_v16  ;;  %v498_v22 = vand.u32 2147483647, %v488_v16  ;;  %vm494_vm7 = vweird.f32 %v488_v16 }
 0xa30   :  { %1461 = vtanh.f32 %v483_v10 }
 0xa31   :  { %v501_v12 = vor.u32 1.1754944e-38, %v500_v20  ;;  %vm499_vm9 = vcmp.eq.f32.partialorder %v498_v22, 8.507059e+37 }
 0xa35   :  { %v1460_v17 = vpop.eup %1459 }
 0xa36   :  { %v490_v18 = vmul.f32 %v1460_v17, %v488_v16  ;;  %vm495_vm6 = vweird.f32 %v1460_v17  ;;  %v1462_v25 = vpop.eup %1461 }
 0xa37   :  { %vm496_vm8 = vmor %vm494_vm7, %vm495_vm6 }
 0xa38   :  { %v491_v19 = vsub.f32 1.0, %v490_v18 }
 0xa3a   :  { %v492_v21 = vmul.f32 %v1460_v17, %v491_v19 }
 0xa3c   :  { %v493_v23 = vadd.f32 %v1460_v17, %v492_v21 }
 0xa3e   :  { %v497_v24 = vsel %vm496_vm8, %v1460_v17, %v493_v23 }
 0xa3f   :  { %v502_v26 = vsel %vm499_vm9, %v501_v12, %v497_v24 }
 0xa40   :  { %v504_v27 = vsel %vm1840_vm4, %v1462_v25, %v502_v26 }
 0xa41   :  { %510 = vrot.lane.b32.xlu1 %v504_v27, %s1713_s2  ;;  %v508_v32 = vmul.f32 %v506_v31, %v504_v27 }
 0xab3   :  { %v511_v29 = vpop.permute.xlu1 %510 }
 0xab4   :  { %v513_v30 = vmul.f32 %v511_v29, %v504_v27 }
 0xab6   :  { %515 = vrot.lane.b32.xlu2 %v513_v30, %s1714_s29 }
 0xb10   :  { %v516_v33 = vpop.permute.xlu2 %515 }
 0xb11   :  { %v518_v34 = vadd.f32 %v516_v33, %v508_v32 }
 0xb13   :  { %1463 = vtanh.f32 %v518_v34  ;;  %v576_v58 = vrot.slane %v518_v34, 6 }
 0xb19   :  { %v1464_v35 = vpop.eup %1463 }
 0xb1a   :  { %521 = vrot.lane.b32.xlu0 %v1464_v35, %s1713_s2 }
 0xb8c   :  { %v522_v36 = vpop.permute.xlu0 %521 }
 0xb8d   :  { %v524_v37 = vmul.f32 %v522_v36, %v504_v27 }
 0xb8f   :  { %526 = vrot.lane.b32.xlu1 %v524_v37, %s1714_s29 }
 0xc01   :  { %v527_v38 = vpop.permute.xlu1 %526 }
 0xc02   :  { %1383 = vmatmul.msk.f32.vlgmr.msrb.gmra.mxu3 %vm124_vm0, %v527_v38 }
 0xc85   :  { %v547_v39 = vpop.f32.mrf.mxu3 }
 0xc86   :  { %v551_v40 = vrot.slane %v547_v39, 6 }
 0xc88   :  { %v553_v41 = vadd.f32 %v551_v40, %v1881_v8 }
 0xc8a   :  { %v1384_v42 = vmul.f32 -1.442695, %v553_v41 }
 0xc8c   :  { %1465 = vpow2.f32 %v1384_v42 }
 0xc92   :  { %v1466_v43 = vpop.eup %1465 }
 0xc93   :  { %v558_v44 = vadd.f32 1.0, %v1466_v43 }
 0xc95   :  { %1467 = vrcp.f32 %v558_v44  ;;  %v570_v48 = vand.u32 2147483648, %v558_v44  ;;  %v568_v50 = vand.u32 2147483647, %v558_v44  ;;  %vm564_vm11 = vweird.f32 %v558_v44 }
 0xc96   :  { %1469 = vtanh.f32 %v553_v41 }
 0xc97   :  { %v571_v52 = vor.u32 1.1754944e-38, %v570_v48  ;;  %vm569_vm13 = vcmp.eq.f32.partialorder %v568_v50, 8.507059e+37 }
 0xc9b   :  { %v1468_v45 = vpop.eup %1467 }
 0xc9c   :  { %v560_v46 = vmul.f32 %v1468_v45, %v558_v44  ;;  %vm565_vm10 = vweird.f32 %v1468_v45  ;;  %v1470_v54 = vpop.eup %1469 }
 0xc9d   :  { %vm566_vm12 = vmor %vm564_vm11, %vm565_vm10 }
 0xc9e   :  { %v561_v47 = vsub.f32 1.0, %v560_v46 }
 0xca0   :  { %v562_v49 = vmul.f32 %v1468_v45, %v561_v47 }
 0xca2   :  { %v563_v51 = vadd.f32 %v1468_v45, %v562_v49 }
 0xca4   :  { %v567_v53 = vsel %vm566_vm12, %v1468_v45, %v563_v51 }
 0xca5   :  { %v572_v55 = vsel %vm569_vm13, %v571_v52, %v567_v53 }
 0xca6   :  { %v574_v56 = vsel %vm1840_vm4, %v1470_v54, %v572_v55 }
 0xca7   :  { %580 = vrot.lane.b32.xlu2 %v574_v56, %s1713_s2  ;;  %v578_v59 = vmul.f32 %v576_v58, %v574_v56 }
 0xd01   :  { %v581_v14 = vpop.permute.xlu2 %580 }
 0xd02   :  { %v583_v57 = vmul.f32 %v581_v14, %v574_v56 }
 0xd04   :  { %585 = vrot.lane.b32.xlu0 %v583_v57, %s1714_s29 }
 0xd76   :  { %v586_v60 = vpop.permute.xlu0 %585 }
 0xd77   :  { %v588_v61 = vadd.f32 %v586_v60, %v578_v59  ;;  %v115_v59 = vld [vmem:[#allocation8 + $0x18] sm:$0xff]  ;;  %v114_v60 = vld [vmem:[#allocation8 + $0x10] sm:$0xff] }
 0xd78   :  { %755 = vmatpush.msra.mxu3 %v115_v59  ;;  %822 = vmatpush.msra.mxu1 %v115_v59 }
 0xd79   :  { %1471 = vtanh.f32 %v588_v61  ;;  %v647_v26 = vrot.slane %v588_v61, 6  ;;  %v113_v61 = vld [vmem:[#allocation8 + $0x8] sm:$0xff]  ;;  %893 = vmatpush.msrb.mxu2 %v115_v59  ;;  %1035 = vmatpush.msrb.mxu0 %v115_v59 }
 0xd7a   :  { %756 = vmatpush.msra.mxu3 %v114_v60  ;;  %823 = vmatpush.msra.mxu1 %v114_v60 }
 0xd7b   :  { %894 = vmatpush.msrb.mxu2 %v114_v60  ;;  %1036 = vmatpush.msrb.mxu0 %v114_v60 }
 0xd7c   :  { %757 = vmatpush.msra.mxu3 %v113_v61  ;;  %824 = vmatpush.msra.mxu1 %v113_v61 }
 0xd7d   :  { %895 = vmatpush.msrb.mxu2 %v113_v61  ;;  %1037 = vmatpush.msrb.mxu0 %v113_v61 }
 0xd7f   :  { %v1472_v62 = vpop.eup %1471 }
 0xd80   :  { %591 = vrot.lane.b32.xlu1 %v1472_v62, %s1713_s2  ;;  %v112_v62 = vld [vmem:[#allocation8] sm:$0xff] }
 0xd81   :  { %758 = vmatpush.msra.mxu3 %v112_v62  ;;  %825 = vmatpush.msra.mxu1 %v112_v62 }
 0xd82   :  { %896 = vmatpush.msrb.mxu2 %v112_v62  ;;  %1038 = vmatpush.msrb.mxu0 %v112_v62 }
 0xd83   :  { %964 = vmatpush.msrb.mxu3 %v115_v59 }
 0xd85   :  { %965 = vmatpush.msrb.mxu3 %v114_v60 }
 0xd87   :  { %966 = vmatpush.msrb.mxu3 %v113_v61 }
 0xd89   :  { %967 = vmatpush.msrb.mxu3 %v112_v62 }
 0xdf2   :  { %v592_v63 = vpop.permute.xlu1 %591 }
 0xdf3   :  { %v594_v0 = vmul.f32 %v592_v63, %v574_v56 }
 0xdf5   :  { %v596_v1 = vrot.slane %v594_v0, 2 }
 0xdf7   :  { %597 = vrot.lane.b32.xlu2 %v596_v1, %s1714_s29 }
 0xe51   :  { %v598_v2 = vpop.permute.xlu2 %597 }
 0xe52   :  { %1385 = vmatmul.msk.f32.vlgmr.msrb.gmra.mxu1 %vm124_vm0, %v598_v2  ;;  %v118_v2 = vld [vmem:[#allocation2 + $0x10] sm:$0xff] }
 0xe53   :  { %1102 = vmatpush.msrb.mxu1 %v115_v59  ;;  %1372 = vmatmul.msk.f32.gmra.mxu0 %vm124_vm0, %v118_v2 }
 0xe55   :  { %1103 = vmatpush.msrb.mxu1 %v114_v60 }
 0xe57   :  { %1104 = vmatpush.msrb.mxu1 %v113_v61 }
 0xe59   :  { %1105 = vmatpush.msrb.mxu1 %v112_v62 }
 0xecf   :  { %v618_v3 = vpop.f32.mrf.mxu1 }
 0xed0   :  { %v622_v4 = vrot.slane %v618_v3, 4 }
 0xed2   :  { %v624_v5 = vadd.f32 %v622_v4, %v1881_v8  ;;  %v160_v4 = vpop.f32.mrf.mxu0 }
 0xed4   :  { %v1386_v6 = vmul.f32 -1.442695, %v624_v5 }
 0xed6   :  { %1473 = vpow2.f32 %v1386_v6 }
 0xedc   :  { %v1474_v7 = vpop.eup %1473 }
 0xedd   :  { %v629_v9 = vadd.f32 1.0, %v1474_v7 }
 0xedf   :  { %1475 = vrcp.f32 %v629_v9  ;;  %v641_v16 = vand.u32 2147483648, %v629_v9  ;;  %v639_v18 = vand.u32 2147483647, %v629_v9  ;;  %vm635_vm15 = vweird.f32 %v629_v9 }
 0xee0   :  { %1477 = vtanh.f32 %v624_v5  ;;  %v1922_v5 = vld [vmem:[%s2027_s3] ss:$0 sm:$0xff] }
 0xee1   :  { %v642_v20 = vor.u32 1.1754944e-38, %v641_v16  ;;  %vm640_vm2 = vcmp.eq.f32.partialorder %v639_v18, 8.507059e+37  ;;  %v1925_v6 = vadd.f32 %v1922_v5, %v160_v4 }
 0xee5   :  { %v1476_v10 = vpop.eup %1475 }
 0xee6   :  { %v631_v13 = vmul.f32 %v1476_v10, %v629_v9  ;;  %vm636_vm14 = vweird.f32 %v1476_v10  ;;  %v1478_v22 = vpop.eup %1477 }
 0xee7   :  { %vm637_vm1 = vmor %vm635_vm15, %vm636_vm14 }
 0xee8   :  { %v632_v15 = vsub.f32 1.0, %v631_v13 }
 0xeea   :  { %v633_v17 = vmul.f32 %v1476_v10, %v632_v15 }
 0xeec   :  { %v634_v19 = vadd.f32 %v1476_v10, %v633_v17 }
 0xeee   :  { %v638_v21 = vsel %vm637_vm1, %v1476_v10, %v634_v19 }
 0xeef   :  { %v643_v23 = vsel %vm640_vm2, %v642_v20, %v638_v21 }
 0xef0   :  { %v645_v12 = vsel %vm1840_vm4, %v1478_v22, %v643_v23 }
 0xef1   :  { %651 = vrot.lane.b32.xlu0 %v645_v12, %s1713_s2  ;;  %v649_v27 = vmul.f32 %v647_v26, %v645_v12 }
 0xf63   :  { %v652_v24 = vpop.permute.xlu0 %651 }
 0xf64   :  { %v654_v25 = vmul.f32 %v652_v24, %v645_v12 }
 0xf66   :  { %656 = vrot.lane.b32.xlu1 %v654_v25, %s1714_s29 }
 0xfd8   :  { %v657_v29 = vpop.permute.xlu1 %656 }
 0xfd9   :  { %v659_v30 = vadd.f32 %v657_v29, %v649_v27 }
 0xfdb   :  { %1479 = vtanh.f32 %v659_v30  ;;  %v718_v55 = vrot.slane %v659_v30, 6 }
 0xfe1   :  { %v1480_v31 = vpop.eup %1479 }
 0xfe2   :  { %662 = vrot.lane.b32.xlu2 %v1480_v31, %s1713_s2 }
0x103c   :  { %v663_v32 = vpop.permute.xlu2 %662 }
0x103d   :  { %v665_v33 = vmul.f32 %v663_v32, %v645_v12 }
0x103f   :  { %v667_v34 = vrot.slane %v665_v33, 4 }
0x1041   :  { %668 = vrot.lane.b32.xlu0 %v667_v34, %s1714_s29 }
0x10b3   :  { %v669_v35 = vpop.permute.xlu0 %668 }
0x10b4   :  { %1387 = vmatmul.msk.f32.vlgmr.msra.gmra.mxu2 %vm124_vm0, %v669_v35 }
0x10b5   :  { %1173 = vmatpush.msra.mxu2 %v115_v59 }
0x10b7   :  { %1174 = vmatpush.msra.mxu2 %v114_v60 }
0x10b9   :  { %1175 = vmatpush.msra.mxu2 %v113_v61 }
0x10bb   :  { %1176 = vmatpush.msra.mxu2 %v112_v62 }
0x1137   :  { %v689_v36 = vpop.f32.mrf.mxu2 }
0x1138   :  { %v693_v37 = vrot.slane %v689_v36, 2 }
0x113a   :  { %v695_v38 = vadd.f32 %v693_v37, %v1881_v8 }
0x113c   :  { %v1388_v39 = vmul.f32 -1.442695, %v695_v38 }
0x113e   :  { %1481 = vpow2.f32 %v1388_v39 }
0x1144   :  { %v1482_v40 = vpop.eup %1481 }
0x1145   :  { %v700_v41 = vadd.f32 1.0, %v1482_v40 }
0x1147   :  { %1483 = vrcp.f32 %v700_v41  ;;  %v712_v45 = vand.u32 2147483648, %v700_v41  ;;  %v710_v47 = vand.u32 2147483647, %v700_v41  ;;  %vm706_vm5 = vweird.f32 %v700_v41 }
0x1148   :  { %1485 = vtanh.f32 %v695_v38 }
0x1149   :  { %v713_v49 = vor.u32 1.1754944e-38, %v712_v45  ;;  %vm711_vm7 = vcmp.eq.f32.partialorder %v710_v47, 8.507059e+37 }
0x114d   :  { %v1484_v42 = vpop.eup %1483 }
0x114e   :  { %v702_v43 = vmul.f32 %v1484_v42, %v700_v41  ;;  %vm707_vm3 = vweird.f32 %v1484_v42  ;;  %v1486_v8 = vpop.eup %1485 }
0x114f   :  { %vm708_vm6 = vmor %vm706_vm5, %vm707_vm3 }
0x1150   :  { %v703_v44 = vsub.f32 1.0, %v702_v43 }
0x1152   :  { %v704_v46 = vmul.f32 %v1484_v42, %v703_v44 }
0x1154   :  { %v705_v48 = vadd.f32 %v1484_v42, %v704_v46 }
0x1156   :  { %v709_v50 = vsel %vm708_vm6, %v1484_v42, %v705_v48  ;;  %vm1297_vm6 = vcmask 1041408  }
0x1157   :  { %v714_v51 = vsel %vm711_vm7, %v713_v49, %v709_v50  ;;  %vm1299_vm7 = vcmask 1043456  }
0x1158   :  { %v716_v52 = vsel %vm1840_vm4, %v1486_v8, %v714_v51 }
0x1159   :  { %722 = vrot.lane.b32.xlu1 %v716_v52, %s1713_s2  ;;  %v720_v56 = vmul.f32 %v718_v55, %v716_v52 }
0x11cb   :  { %v723_v53 = vpop.permute.xlu1 %722 }
0x11cc   :  { %v725_v54 = vmul.f32 %v723_v53, %v716_v52 }
0x11ce   :  { %727 = vrot.lane.b32.xlu2 %v725_v54, %s1714_s29 }
0x1228   :  { %v728_v14 = vpop.permute.xlu2 %727 }
0x1229   :  { %v1912_v57 = vadd.f32 %v728_v14, %v720_v56 }
0x122b   :  { %1487 = vtanh.f32 %v1912_v57  ;;  %v786_v30 = vrot.slane %v1912_v57, 6 }
0x1231   :  { %v1488_v58 = vpop.eup %1487 }
0x1232   :  { %733 = vrot.lane.b32.xlu0 %v1488_v58, %s1713_s2 }
0x12a4   :  { %v734_v63 = vpop.permute.xlu0 %733 }
0x12a5   :  { %v736_v0 = vmul.f32 %v734_v63, %v716_v52 }
0x12a7   :  { %v738_v1 = vrot.slane %v736_v0, 6 }
0x12a9   :  { %739 = vrot.lane.b32.xlu1 %v738_v1, %s1714_s29 }
0x131b   :  { %v740_v3 = vpop.permute.xlu1 %739 }
0x131c   :  { %1389 = vmatmul.msk.f32.vlgmr.msra.gmra.mxu3 %vm124_vm0, %v740_v3 }
0x131d   :  { %1244 = vmatpush.msra.mxu3 %v115_v59 }
0x131f   :  { %1245 = vmatpush.msra.mxu3 %v114_v60 }
0x1321   :  { %1246 = vmatpush.msra.mxu3 %v113_v61 }
0x1323   :  { %1247 = vmatpush.msra.mxu3 %v112_v62 }
0x139f   :  { %v760_v7 = vpop.f32.mrf.mxu3 }
0x13a0   :  { %v763_v9 = vadd.f32 %v760_v7, %v1925_v6 }
0x13a2   :  { %v1390_v10 = vmul.f32 -1.442695, %v763_v9 }
0x13a4   :  { %1489 = vpow2.f32 %v1390_v10 }
0x13aa   :  { %v1490_v13 = vpop.eup %1489 }
0x13ab   :  { %v768_v15 = vadd.f32 1.0, %v1490_v13 }
0x13ad   :  { %1491 = vrcp.f32 %v768_v15  ;;  %v780_v19 = vand.u32 2147483648, %v768_v15  ;;  %v778_v21 = vand.u32 2147483647, %v768_v15  ;;  %vm774_vm9 = vweird.f32 %v768_v15 }
0x13ae   :  { %1493 = vtanh.f32 %v763_v9 }
0x13af   :  { %v781_v23 = vor.u32 1.1754944e-38, %v780_v19  ;;  %vm779_vm11 = vcmp.eq.f32.partialorder %v778_v21, 8.507059e+37 }
0x13b3   :  { %v1492_v16 = vpop.eup %1491 }
0x13b4   :  { %v770_v17 = vmul.f32 %v1492_v16, %v768_v15  ;;  %vm775_vm8 = vweird.f32 %v1492_v16  ;;  %v1494_v24 = vpop.eup %1493 }
0x13b5   :  { %vm776_vm10 = vmor %vm774_vm9, %vm775_vm8 }
0x13b6   :  { %v771_v18 = vsub.f32 1.0, %v770_v17 }
0x13b8   :  { %v772_v20 = vmul.f32 %v1492_v16, %v771_v18 }
0x13ba   :  { %v773_v22 = vadd.f32 %v1492_v16, %v772_v20 }
0x13bc   :  { %v777_v12 = vsel %vm776_vm10, %v1492_v16, %v773_v22 }
0x13bd   :  { %v782_v25 = vsel %vm779_vm11, %v781_v23, %v777_v12 }
0x13be   :  { %v784_v26 = vsel %vm1840_vm4, %v1494_v24, %v782_v25 }
0x13bf   :  { %790 = vrot.lane.b32.xlu2 %v784_v26, %s1713_s2  ;;  %v788_v31 = vmul.f32 %v786_v30, %v784_v26 }
0x1419   :  { %v791_v27 = vpop.permute.xlu2 %790 }
0x141a   :  { %v793_v29 = vmul.f32 %v791_v27, %v784_v26 }
0x141c   :  { %795 = vrot.lane.b32.xlu0 %v793_v29, %s1714_s29 }
0x148e   :  { %v796_v32 = vpop.permute.xlu0 %795 }
0x148f   :  { %v798_v33 = vadd.f32 %v796_v32, %v788_v31 }
0x1491   :  { %1495 = vtanh.f32 %v798_v33  ;;  %v856_v14 = vrot.slane %v798_v33, 6 }
0x1497   :  { %v1496_v34 = vpop.eup %1495 }
0x1498   :  { %801 = vrot.lane.b32.xlu1 %v1496_v34, %s1713_s2 }
0x150a   :  { %v802_v35 = vpop.permute.xlu1 %801 }
0x150b   :  { %v1934_v36 = vmul.f32 %v802_v35, %v784_v26 }
0x150d   :  { %806 = vrot.lane.b32.xlu2 %v1934_v36, %s1714_s29 }
0x1567   :  { %v807_v37 = vpop.permute.xlu2 %806 }
0x1568   :  { %1391 = vmatmul.msk.f32.vlgmr.msra.gmra.mxu1 %vm124_vm0, %v807_v37 }
0x15e5   :  { %v827_v38 = vpop.f32.mrf.mxu1 }
0x15e6   :  { %v831_v39 = vrot.slane %v827_v38, 6 }
0x15e8   :  { %v833_v40 = vadd.f32 %v831_v39, %v1925_v6 }
0x15ea   :  { %v1392_v41 = vmul.f32 -1.442695, %v833_v40 }
0x15ec   :  { %1497 = vpow2.f32 %v1392_v41 }
0x15f2   :  { %v1498_v42 = vpop.eup %1497 }
0x15f3   :  { %v838_v43 = vadd.f32 1.0, %v1498_v42 }
0x15f5   :  { %1499 = vrcp.f32 %v838_v43  ;;  %v850_v47 = vand.u32 2147483648, %v838_v43  ;;  %v848_v49 = vand.u32 2147483647, %v838_v43  ;;  %vm844_vm13 = vweird.f32 %v838_v43 }
0x15f6   :  { %1501 = vtanh.f32 %v833_v40 }
0x15f7   :  { %v851_v8 = vor.u32 1.1754944e-38, %v850_v47  ;;  %vm849_vm15 = vcmp.eq.f32.partialorder %v848_v49, 8.507059e+37 }
0x15fb   :  { %v1500_v44 = vpop.eup %1499 }
0x15fc   :  { %v840_v45 = vmul.f32 %v1500_v44, %v838_v43  ;;  %vm845_vm12 = vweird.f32 %v1500_v44  ;;  %v1502_v52 = vpop.eup %1501 }
0x15fd   :  { %vm846_vm14 = vmor %vm844_vm13, %vm845_vm12  ;;  %vm1301_vm12 = vcmask 1045504  }
0x15fe   :  { %v841_v46 = vsub.f32 1.0, %v840_v45 }
0x1600   :  { %v842_v48 = vmul.f32 %v1500_v44, %v841_v46 }
0x1602   :  { %v843_v50 = vadd.f32 %v1500_v44, %v842_v48 }
0x1604   :  { %v847_v51 = vsel %vm846_vm14, %v1500_v44, %v843_v50 }
0x1605   :  { %v852_v53 = vsel %vm849_vm15, %v851_v8, %v847_v51 }
0x1606   :  { %v854_v54 = vsel %vm1840_vm4, %v1502_v52, %v852_v53 }
0x1607   :  { %860 = vrot.lane.b32.xlu0 %v854_v54, %s1713_s2  ;;  %v858_v57 = vmul.f32 %v856_v14, %v854_v54 }
0x1679   :  { %v861_v55 = vpop.permute.xlu0 %860 }
0x167a   :  { %v863_v56 = vmul.f32 %v861_v55, %v854_v54 }
0x167c   :  { %865 = vrot.lane.b32.xlu1 %v863_v56, %s1714_s29 }
0x16ee   :  { %v866_v58 = vpop.permute.xlu1 %865 }
0x16ef   :  { %v868_v59 = vadd.f32 %v866_v58, %v858_v57 }
0x16f1   :  { %1503 = vtanh.f32 %v868_v59  ;;  %v927_v26 = vrot.slane %v868_v59, 6 }
0x16f7   :  { %v1504_v60 = vpop.eup %1503 }
0x16f8   :  { %871 = vrot.lane.b32.xlu2 %v1504_v60, %s1713_s2 }
0x1752   :  { %v872_v61 = vpop.permute.xlu2 %871 }
0x1753   :  { %v874_v62 = vmul.f32 %v872_v61, %v854_v54 }
0x1755   :  { %v876_v63 = vrot.slane %v874_v62, 2  ;;  %v1298_v34 = vsel %vm1297_vm6, %v1934_v36, %v874_v62 }
0x1757   :  { %877 = vrot.lane.b32.xlu0 %v876_v63, %s1714_s29 }
0x17c9   :  { %v878_v0 = vpop.permute.xlu0 %877 }
0x17ca   :  { %1393 = vmatmul.msk.f32.vlgmr.msrb.gmra.mxu2 %vm124_vm0, %v878_v0 }
0x184d   :  { %v898_v1 = vpop.f32.mrf.mxu2 }
0x184e   :  { %v902_v2 = vrot.slane %v898_v1, 4  ;;  %v1971_v1 = vadd.f32 %v1922_v5, %v1829_v11 }
0x1850   :  { %v904_v3 = vadd.f32 %v902_v2, %v1925_v6 }
0x1852   :  { %v1394_v4 = vmul.f32 -1.442695, %v904_v3 }
0x1854   :  { %1505 = vpow2.f32 %v1394_v4 }
0x185a   :  { %v1506_v7 = vpop.eup %1505 }
0x185b   :  { %v909_v9 = vadd.f32 1.0, %v1506_v7 }
0x185d   :  { %1507 = vrcp.f32 %v909_v9  ;;  %v921_v16 = vand.u32 2147483648, %v909_v9  ;;  %v919_v18 = vand.u32 2147483647, %v909_v9  ;;  %vm915_vm2 = vweird.f32 %v909_v9 }
0x185e   :  { %1509 = vtanh.f32 %v904_v3 }
0x185f   :  { %v922_v20 = vor.u32 1.1754944e-38, %v921_v16  ;;  %vm920_vm5 = vcmp.eq.f32.partialorder %v919_v18, 8.507059e+37 }
0x1863   :  { %v1508_v10 = vpop.eup %1507 }
0x1864   :  { %v911_v13 = vmul.f32 %v1508_v10, %v909_v9  ;;  %vm916_vm1 = vweird.f32 %v1508_v10  ;;  %v1510_v22 = vpop.eup %1509 }
0x1865   :  { %vm917_vm3 = vmor %vm915_vm2, %vm916_vm1 }
0x1866   :  { %v912_v15 = vsub.f32 1.0, %v911_v13 }
0x1868   :  { %v913_v17 = vmul.f32 %v1508_v10, %v912_v15 }
0x186a   :  { %v914_v19 = vadd.f32 %v1508_v10, %v913_v17 }
0x186c   :  { %v918_v21 = vsel %vm917_vm3, %v1508_v10, %v914_v19 }
0x186d   :  { %v923_v23 = vsel %vm920_vm5, %v922_v20, %v918_v21 }
0x186e   :  { %v925_v12 = vsel %vm1840_vm4, %v1510_v22, %v923_v23 }
0x186f   :  { %931 = vrot.lane.b32.xlu1 %v925_v12, %s1713_s2  ;;  %v929_v27 = vmul.f32 %v927_v26, %v925_v12 }
0x18e1   :  { %v932_v24 = vpop.permute.xlu1 %931 }
0x18e2   :  { %v934_v25 = vmul.f32 %v932_v24, %v925_v12 }
0x18e4   :  { %936 = vrot.lane.b32.xlu2 %v934_v25, %s1714_s29 }
0x193e   :  { %v937_v29 = vpop.permute.xlu2 %936 }
0x193f   :  { %v939_v30 = vadd.f32 %v937_v29, %v929_v27 }
0x1941   :  { %1511 = vtanh.f32 %v939_v30  ;;  %v998_v56 = vrot.slane %v939_v30, 6 }
0x1947   :  { %v1512_v31 = vpop.eup %1511 }
0x1948   :  { %942 = vrot.lane.b32.xlu0 %v1512_v31, %s1713_s2 }
0x19ba   :  { %v943_v32 = vpop.permute.xlu0 %942 }
0x19bb   :  { %v945_v33 = vmul.f32 %v943_v32, %v925_v12 }
0x19bd   :  { %v947_v35 = vrot.slane %v945_v33, 4  ;;  %v1300_v37 = vsel %vm1299_vm7, %v1298_v34, %v945_v33 }
0x19bf   :  { %948 = vrot.lane.b32.xlu1 %v947_v35, %s1714_s29 }
0x1a31   :  { %v949_v38 = vpop.permute.xlu1 %948 }
0x1a32   :  { %1395 = vmatmul.msk.f32.vlgmr.msrb.gmra.mxu3 %vm124_vm0, %v949_v38 }
0x1ab5   :  { %v969_v39 = vpop.f32.mrf.mxu3 }
0x1ab6   :  { %v973_v40 = vrot.slane %v969_v39, 2 }
0x1ab8   :  { %v975_v41 = vadd.f32 %v973_v40, %v1925_v6 }
0x1aba   :  { %v1396_v42 = vmul.f32 -1.442695, %v975_v41 }
0x1abc   :  { %1513 = vpow2.f32 %v1396_v42 }
0x1ac2   :  { %v1514_v43 = vpop.eup %1513 }
0x1ac3   :  { %v980_v44 = vadd.f32 1.0, %v1514_v43 }
0x1ac5   :  { %1515 = vrcp.f32 %v980_v44  ;;  %v992_v47 = vand.u32 2147483648, %v980_v44  ;;  %v990_v49 = vand.u32 2147483647, %v980_v44  ;;  %vm986_vm9 = vweird.f32 %v980_v44 }
0x1ac6   :  { %1517 = vtanh.f32 %v975_v41 }
0x1ac7   :  { %v993_v8 = vor.u32 1.1754944e-38, %v992_v47  ;;  %vm991_vm11 = vcmp.eq.f32.partialorder %v990_v49, 8.507059e+37 }
0x1acb   :  { %v1516_v45 = vpop.eup %1515 }
0x1acc   :  { %v982_v46 = vmul.f32 %v1516_v45, %v980_v44  ;;  %vm987_vm8 = vweird.f32 %v1516_v45  ;;  %v1518_v6 = vpop.eup %1517 }
0x1acd   :  { %vm988_vm10 = vmor %vm986_vm9, %vm987_vm8 }
0x1ace   :  { %v983_v36 = vsub.f32 1.0, %v982_v46 }
0x1ad0   :  { %v984_v48 = vmul.f32 %v1516_v45, %v983_v36 }
0x1ad2   :  { %v985_v50 = vadd.f32 %v1516_v45, %v984_v48 }
0x1ad4   :  { %v989_v51 = vsel %vm988_vm10, %v1516_v45, %v985_v50 }
0x1ad5   :  { %v994_v52 = vsel %vm991_vm11, %v993_v8, %v989_v51 }
0x1ad6   :  { %v996_v53 = vsel %vm1840_vm4, %v1518_v6, %v994_v52 }
0x1ad7   :  { %1002 = vrot.lane.b32.xlu2 %v996_v53, %s1713_s2  ;;  %v1000_v14 = vmul.f32 %v998_v56, %v996_v53 }
0x1b31   :  { %v1003_v54 = vpop.permute.xlu2 %1002 }
0x1b32   :  { %v1005_v55 = vmul.f32 %v1003_v54, %v996_v53 }
0x1b34   :  { %1007 = vrot.lane.b32.xlu0 %v1005_v55, %s1714_s29 }
0x1ba6   :  { %v1008_v57 = vpop.permute.xlu0 %1007 }
0x1ba7   :  { %v1010_v58 = vadd.f32 %v1008_v57, %v1000_v14 }
0x1ba9   :  { %1519 = vtanh.f32 %v1010_v58  ;;  %v1066_v24 = vrot.slane %v1010_v58, 6 }
0x1baf   :  { %v1520_v59 = vpop.eup %1519 }
0x1bb0   :  { %1013 = vrot.lane.b32.xlu1 %v1520_v59, %s1713_s2 }
0x1c22   :  { %v1014_v60 = vpop.permute.xlu1 %1013 }
0x1c23   :  { %v1016_v61 = vmul.f32 %v1014_v60, %v996_v53 }
0x1c25   :  { %v1018_v62 = vrot.slane %v1016_v61, 6  ;;  %v1965_v63 = vsel %vm1301_vm12, %v1300_v37, %v1016_v61 }
0x1c27   :  { %1019 = vrot.lane.b32.xlu2 %v1018_v62, %s1714_s29 }
0x1c81   :  { %v1020_v0 = vpop.permute.xlu2 %1019 }
0x1c82   :  { %1397 = vmatmul.msk.f32.vlgmr.msrb.gmra.mxu0 %vm124_vm0, %v1020_v0 }
0x1cff   :  { %v1040_v2 = vpop.f32.mrf.mxu0 }
0x1d00   :  { %v1043_v3 = vadd.f32 %v1040_v2, %v1971_v1 }
0x1d02   :  { %v1398_v4 = vmul.f32 -1.442695, %v1043_v3 }
0x1d04   :  { %1521 = vpow2.f32 %v1398_v4 }
0x1d0a   :  { %v1522_v7 = vpop.eup %1521 }
0x1d0b   :  { %v1048_v9 = vadd.f32 1.0, %v1522_v7 }
0x1d0d   :  { %1523 = vrcp.f32 %v1048_v9  ;;  %v1060_v16 = vand.u32 2147483648, %v1048_v9  ;;  %v1058_v18 = vand.u32 2147483647, %v1048_v9  ;;  %vm1054_vm14 = vweird.f32 %v1048_v9 }
0x1d0e   :  { %1525 = vtanh.f32 %v1043_v3 }
0x1d0f   :  { %v1061_v11 = vor.u32 1.1754944e-38, %v1060_v16  ;;  %vm1059_vm1 = vcmp.eq.f32.partialorder %v1058_v18, 8.507059e+37 }
0x1d13   :  { %v1524_v10 = vpop.eup %1523 }
0x1d14   :  { %v1050_v13 = vmul.f32 %v1524_v10, %v1048_v9  ;;  %vm1055_vm13 = vweird.f32 %v1524_v10  ;;  %v1526_v20 = vpop.eup %1525 }
0x1d15   :  { %vm1056_vm15 = vmor %vm1054_vm14, %vm1055_vm13 }
0x1d16   :  { %v1051_v15 = vsub.f32 1.0, %v1050_v13 }
0x1d18   :  { %v1052_v17 = vmul.f32 %v1524_v10, %v1051_v15 }
0x1d1a   :  { %v1053_v19 = vadd.f32 %v1524_v10, %v1052_v17 }
0x1d1c   :  { %v1057_v5 = vsel %vm1056_vm15, %v1524_v10, %v1053_v19 }
0x1d1d   :  { %v1062_v21 = vsel %vm1059_vm1, %v1061_v11, %v1057_v5 }
0x1d1e   :  { %v1064_v22 = vsel %vm1840_vm4, %v1526_v20, %v1062_v21 }
0x1d1f   :  { %1070 = vrot.lane.b32.xlu0 %v1064_v22, %s1713_s2  ;;  %v1068_v25 = vmul.f32 %v1066_v24, %v1064_v22 }
0x1d91   :  { %v1071_v23 = vpop.permute.xlu0 %1070 }
0x1d92   :  { %v1073_v12 = vmul.f32 %v1071_v23, %v1064_v22 }
0x1d94   :  { %1075 = vrot.lane.b32.xlu1 %v1073_v12, %s1714_s29 }
0x1e06   :  { %v1076_v26 = vpop.permute.xlu1 %1075 }
0x1e07   :  { %v1078_v27 = vadd.f32 %v1076_v26, %v1068_v25 }
0x1e09   :  { %1527 = vtanh.f32 %v1078_v27  ;;  %v1136_v6 = vrot.slane %v1078_v27, 6 }
0x1e0f   :  { %v1528_v29 = vpop.eup %1527 }
0x1e10   :  { %1081 = vrot.lane.b32.xlu2 %v1528_v29, %s1713_s2 }
0x1e6a   :  { %v1082_v30 = vpop.permute.xlu2 %1081 }
0x1e6b   :  { %v1979_v31 = vmul.f32 %v1082_v30, %v1064_v22 }
0x1e6d   :  { %1086 = vrot.lane.b32.xlu0 %v1979_v31, %s1714_s29 }
0x1edf   :  { %v1087_v32 = vpop.permute.xlu0 %1086 }
0x1ee0   :  { %1399 = vmatmul.msk.f32.vlgmr.msrb.gmra.mxu1 %vm124_vm0, %v1087_v32 }
0x1f5d   :  { %v1107_v33 = vpop.f32.mrf.mxu1 }
0x1f5e   :  { %v1111_v34 = vrot.slane %v1107_v33, 6 }
0x1f60   :  { %v1113_v35 = vadd.f32 %v1111_v34, %v1971_v1 }
0x1f62   :  { %v1400_v37 = vmul.f32 -1.442695, %v1113_v35 }
0x1f64   :  { %1529 = vpow2.f32 %v1400_v37 }
0x1f6a   :  { %v1530_v38 = vpop.eup %1529 }
0x1f6b   :  { %v1118_v39 = vadd.f32 1.0, %v1530_v38 }
0x1f6d   :  { %1531 = vrcp.f32 %v1118_v39  ;;  %v1130_v43 = vand.u32 2147483648, %v1118_v39  ;;  %v1128_v45 = vand.u32 2147483647, %v1118_v39  ;;  %vm1124_vm3 = vweird.f32 %v1118_v39 }
0x1f6e   :  { %1533 = vtanh.f32 %v1113_v35 }
0x1f6f   :  { %v1131_v36 = vor.u32 1.1754944e-38, %v1130_v43  ;;  %vm1129_vm8 = vcmp.eq.f32.partialorder %v1128_v45, 8.507059e+37 }
0x1f73   :  { %v1532_v40 = vpop.eup %1531 }
0x1f74   :  { %v1120_v41 = vmul.f32 %v1532_v40, %v1118_v39  ;;  %vm1125_vm2 = vweird.f32 %v1532_v40  ;;  %v1534_v48 = vpop.eup %1533 }
0x1f75   :  { %vm1126_vm5 = vmor %vm1124_vm3, %vm1125_vm2 }
0x1f76   :  { %v1121_v42 = vsub.f32 1.0, %v1120_v41 }
0x1f78   :  { %v1122_v44 = vmul.f32 %v1532_v40, %v1121_v42 }
0x1f7a   :  { %v1123_v46 = vadd.f32 %v1532_v40, %v1122_v44 }
0x1f7c   :  { %v1127_v47 = vsel %vm1126_vm5, %v1532_v40, %v1123_v46 }
0x1f7d   :  { %v1132_v49 = vsel %vm1129_vm8, %v1131_v36, %v1127_v47 }
0x1f7e   :  { %v1134_v50 = vsel %vm1840_vm4, %v1534_v48, %v1132_v49  ;;  %v1309_v49 = vld [vmem:[#allocation10 + $0x18] sm:$0xff] }
0x1f7f   :  { %1140 = vrot.lane.b32.xlu1 %v1134_v50, %s1713_s2  ;;  %v1138_v52 = vmul.f32 %v1136_v6, %v1134_v50  ;;  %1336 = vmatpush.msra.mxu0 %v1309_v49 }
0x1ff1   :  { %v1141_v8 = vpop.permute.xlu1 %1140 }
0x1ff2   :  { %v1143_v51 = vmul.f32 %v1141_v8, %v1134_v50  ;;  %v1307_v8 = vld [vmem:[#allocation10 + $0x8] sm:$0xff] }
0x1ff4   :  { %1145 = vrot.lane.b32.xlu2 %v1143_v51, %s1714_s29  ;;  %v1306_v51 = vld [vmem:[#allocation10] sm:$0xff] }
0x204e   :  { %v1146_v53 = vpop.permute.xlu2 %1145 }
0x204f   :  { %v1148_v54 = vadd.f32 %v1146_v53, %v1138_v52 }
0x2051   :  { %1535 = vtanh.f32 %v1148_v54  ;;  %v1207_v21 = vrot.slane %v1148_v54, 6 }
0x2057   :  { %v1536_v55 = vpop.eup %1535 }
0x2058   :  { %1151 = vrot.lane.b32.xlu0 %v1536_v55, %s1713_s2 }
0x20ca   :  { %v1152_v56 = vpop.permute.xlu0 %1151 }
0x20cb   :  { %v1154_v14 = vmul.f32 %v1152_v56, %v1134_v50  ;;  %v1308_v50 = vld [vmem:[#allocation10 + $0x10] sm:$0xff] }
0x20cc   :  { %1337 = vmatpush.msra.mxu0 %v1308_v50 }
0x20cd   :  { %v1156_v57 = vrot.slane %v1154_v14, 2  ;;  %v1303_v27 = vsel %vm1297_vm6, %v1979_v31, %v1154_v14  ;;  %v1424_v14 = vld [vmem:[%s2031_s7] ss:$0 sm:$0xff] }
0x20ce   :  { %1338 = vmatpush.msra.mxu0 %v1307_v8 }
0x20cf   :  { %1157 = vrot.lane.b32.xlu1 %v1156_v57, %s1714_s29 }
0x20d0   :  { %1339 = vmatpush.msra.mxu0 %v1306_v51 }
0x2141   :  { %v1158_v58 = vpop.permute.xlu1 %1157 }
0x2142   :  { %1401 = vmatmul.msk.f32.vlgmr.msra.gmra.mxu2 %vm124_vm0, %v1158_v58 }
0x21c5   :  { %v1178_v59 = vpop.f32.mrf.mxu2 }
0x21c6   :  { %v1182_v60 = vrot.slane %v1178_v59, 4 }
0x21c8   :  { %v1184_v61 = vadd.f32 %v1182_v60, %v1971_v1 }
0x21ca   :  { %v1402_v62 = vmul.f32 -1.442695, %v1184_v61 }
0x21cc   :  { %1537 = vpow2.f32 %v1402_v62 }
0x21d2   :  { %v1538_v0 = vpop.eup %1537 }
0x21d3   :  { %v1189_v2 = vadd.f32 1.0, %v1538_v0 }
0x21d5   :  { %1539 = vrcp.f32 %v1189_v2  ;;  %v1201_v9 = vand.u32 2147483648, %v1189_v2  ;;  %v1199_v13 = vand.u32 2147483647, %v1189_v2  ;;  %vm1195_vm10 = vweird.f32 %v1189_v2 }
0x21d6   :  { %1541 = vtanh.f32 %v1184_v61 }
0x21d7   :  { %v1202_v16 = vor.u32 1.1754944e-38, %v1201_v9  ;;  %vm1200_vm13 = vcmp.eq.f32.partialorder %v1199_v13, 8.507059e+37 }
0x21db   :  { %v1540_v3 = vpop.eup %1539 }
0x21dc   :  { %v1191_v4 = vmul.f32 %v1540_v3, %v1189_v2  ;;  %vm1196_vm9 = vweird.f32 %v1540_v3  ;;  %v1542_v18 = vpop.eup %1541 }
0x21dd   :  { %vm1197_vm11 = vmor %vm1195_vm10, %vm1196_vm9 }
0x21de   :  { %v1192_v7 = vsub.f32 1.0, %v1191_v4 }
0x21e0   :  { %v1193_v10 = vmul.f32 %v1540_v3, %v1192_v7 }
0x21e2   :  { %v1194_v15 = vadd.f32 %v1540_v3, %v1193_v10 }
0x21e4   :  { %v1198_v17 = vsel %vm1197_vm11, %v1540_v3, %v1194_v15 }
0x21e5   :  { %v1203_v19 = vsel %vm1200_vm13, %v1202_v16, %v1198_v17 }
0x21e6   :  { %v1205_v11 = vsel %vm1840_vm4, %v1542_v18, %v1203_v19 }
0x21e7   :  { %1211 = vrot.lane.b32.xlu2 %v1205_v11, %s1713_s2  ;;  %v1209_v22 = vmul.f32 %v1207_v21, %v1205_v11 }
0x2241   :  { %v1212_v5 = vpop.permute.xlu2 %1211 }
0x2242   :  { %v1214_v20 = vmul.f32 %v1212_v5, %v1205_v11 }
0x2244   :  { %1216 = vrot.lane.b32.xlu0 %v1214_v20, %s1714_s29 }
0x22b6   :  { %v1217_v23 = vpop.permute.xlu0 %1216 }
0x22b7   :  { %v1219_v12 = vadd.f32 %v1217_v23, %v1209_v22 }
0x22b9   :  { %1543 = vtanh.f32 %v1219_v12  ;;  %v1278_v28 = vrot.slane %v1219_v12, 6 }
0x22bf   :  { %v1544_v24 = vpop.eup %1543 }
0x22c0   :  { %1222 = vrot.lane.b32.xlu1 %v1544_v24, %s1713_s2 }
0x2332   :  { %v1223_v25 = vpop.permute.xlu1 %1222 }
0x2333   :  { %v1225_v26 = vmul.f32 %v1223_v25, %v1205_v11 }
0x2335   :  { %v1227_v29 = vrot.slane %v1225_v26, 4  ;;  %v1304_v30 = vsel %vm1299_vm7, %v1303_v27, %v1225_v26 }
0x2337   :  { %1228 = vrot.lane.b32.xlu2 %v1227_v29, %s1714_s29 }
0x2391   :  { %v1229_v32 = vpop.permute.xlu2 %1228 }
0x2392   :  { %1403 = vmatmul.msk.f32.vlgmr.msra.gmra.mxu3 %vm124_vm0, %v1229_v32 }
0x2415   :  { %v1249_v33 = vpop.f32.mrf.mxu3 }
0x2416   :  { %v1253_v34 = vrot.slane %v1249_v33, 2 }
0x2418   :  { %v1255_v35 = vadd.f32 %v1253_v34, %v1971_v1 }
0x241a   :  { %v1404_v37 = vmul.f32 -1.442695, %v1255_v35 }
0x241c   :  { %1545 = vpow2.f32 %v1404_v37 }
0x2422   :  { %v1546_v38 = vpop.eup %1545 }
0x2423   :  { %v1260_v39 = vadd.f32 1.0, %v1546_v38 }
0x2425   :  { %1547 = vrcp.f32 %v1260_v39  ;;  %v1272_v42 = vand.u32 2147483648, %v1260_v39  ;;  %v1270_v44 = vand.u32 2147483647, %v1260_v39  ;;  %vm1266_vm7 = vweird.f32 %v1260_v39 }
0x2426   :  { %1549 = vtanh.f32 %v1255_v35 }
0x2427   :  { %v1273_v46 = vor.u32 1.1754944e-38, %v1272_v42  ;;  %vm1271_vm15 = vcmp.eq.f32.partialorder %v1270_v44, 8.507059e+37 }
0x242b   :  { %v1548_v40 = vpop.eup %1547 }
0x242c   :  { %v1262_v41 = vmul.f32 %v1548_v40, %v1260_v39  ;;  %vm1267_vm6 = vweird.f32 %v1548_v40  ;;  %v1550_v1 = vpop.eup %1549 }
0x242d   :  { %vm1268_vm14 = vmor %vm1266_vm7, %vm1267_vm6 }
0x242e   :  { %v1263_v31 = vsub.f32 1.0, %v1262_v41 }
0x2430   :  { %v1264_v43 = vmul.f32 %v1548_v40, %v1263_v31 }
0x2432   :  { %v1265_v45 = vadd.f32 %v1548_v40, %v1264_v43 }
0x2434   :  { %v1269_v36 = vsel %vm1268_vm14, %v1548_v40, %v1265_v45 }
0x2435   :  { %v1274_v47 = vsel %vm1271_vm15, %v1273_v46, %v1269_v36 }
0x2436   :  { %v1276_v48 = vsel %vm1840_vm4, %v1550_v1, %v1274_v47 }
0x2437   :  { %1282 = vrot.lane.b32.xlu0 %v1276_v48, %s1713_s2  ;;  %v1280_v54 = vmul.f32 %v1278_v28, %v1276_v48 }
0x243f   :  { %1316 = vrot.lane.b32.xlu0 %v1965_v63, %s1714_s29 }
0x24a9   :  { %v1283_v6 = vpop.permute.xlu0 %1282 }
0x24aa   :  { %v1285_v52 = vmul.f32 %v1283_v6, %v1276_v48 }
0x24ac   :  { %1287 = vrot.lane.b32.xlu1 %v1285_v52, %s1714_s29 }
0x24b1   :  { %v1317_v53 = vpop.permute.xlu0 %1316 }
0x24b2   :  { %1405 = vmatmul.msk.f32.vlgmr.msra.gmra.mxu0 %vm124_vm0, %v1317_v53 }
0x251e   :  { %v1288_v55 = vpop.permute.xlu1 %1287 }
0x251f   :  { %v1290_v56 = vadd.f32 %v1288_v55, %v1280_v54 }
0x2521   :  { %1551 = vtanh.f32 %v1290_v56 }
0x2527   :  { %v1552_v63 = vpop.eup %1551 }
0x2528   :  { %1293 = vrot.lane.b32.xlu2 %v1552_v63, %s1713_s2 }
0x252f   :  { %v1341_v57 = vpop.f32.mrf.mxu0 }
0x2530   :  { %v1342_v58 = vadd.f32 %v1424_v14, %v1341_v57 }
0x2532   :  { %1347 = vst [vmem:[#allocation11] sm:$0xff] %v1342_v58 }
0x2582   :  { %v1294_v59 = vpop.permute.xlu2 %1293 }
0x2583   :  { %v1296_v60 = vmul.f32 %v1294_v59, %v1276_v48 }
0x2585   :  { %v1305_v61 = vsel %vm1301_vm12, %v1304_v30, %v1296_v60 }
0x2586   :  { %1318 = vrot.lane.b32.xlu1 %v1305_v61, %s1714_s29 }
0x25f8   :  { %v1319_v62 = vpop.permute.xlu1 %1318 }
0x25f9   :  { %1406 = vmatmul.msk.f32.gmra.mxu0 %vm124_vm0, %v1319_v62 }
0x2676   :  { %v1344_v0 = vpop.f32.mrf.mxu0 }
0x2677   :  { %v1345_v2 = vadd.f32 %v1424_v14, %v1344_v0 }
0x2679   :  { %1348 = vst [vmem:[#allocation11 + $0x8] sm:$0xff] %v1345_v2 }
0x267a   :  { %1361 = dma.vmem_to_hbm [thread:$0]  %s1354_s12, 256, %s1356_s17, [#allocation4], %s1706_s13, %s1706_s13, %s1707_s14  }
0x267b   :  { %1703 = dma.done.wait [#allocation4], 256  }
0x267c   :  { %1704 = vsyncadd [#allocation4], 4294967040 }
0x267d   :  { %1366 = vsyncpa [#allocation3], 1 }
0x267e   :  { %1367 = vsyncpa [#allocation6], 1 }
0x267f   :  { %1368 = vsyncpa [#allocation9], 1 }
0x2680   :  { %1369 = vsyncpa [#allocation4], 1 }

</bundles_post_ra>
